<compile_context>
chip_gen: v7x
topology: tpu7x:2x2x1
jax: 0.10.0
libtpu: 0.0.40
codegen_flags: <defaults>
</compile_context>

<pallas_src>
import functools

import jax
import jax.numpy as jnp
from jax import lax
from jax.experimental import pallas as pl
from jax.experimental.pallas import tpu as pltpu


_NEG_BIG = -1e30  # bias for padded vocab columns: exp() underflows to exactly 0


def _round_up(x, m):
    return ((x + m - 1) // m) * m


def _vmem_budget_bytes():
    """Generation-aware VMEM budget: ~3/4 of physical per-core VMEM.

    v5e/v6e: 128 MiB -> ~96 MiB budget;  v7x: 64 MiB -> ~48 MiB budget.
    """
    try:
        phys = int(pltpu.get_tpu_info().vmem_capacity_bytes)
    except Exception:
        phys = 64 << 20  # conservative fallback (v7x per-TC size, safe everywhere)
    return (phys * 3) // 4


def _choose_tiles(M, H, V, budget, tm_max=512, tv_max=2048):
    """Pick (TM, TV) so the per-step working set fits the VMEM budget."""
    # 256-aligned token tile: full MXU rows on v6e/v7x (2x256x256), and a
    # multiple of v5e's 128-wide MXU.
    tm = min(tm_max, _round_up(M, 256))
    # lane-aligned vocab tile, never bigger than the (padded) vocab itself
    tv = min(tv_max, _round_up(V, 128))

    def usage(tm_, tv_):
        return (2 * tm_ * H * 2          # hidden tile, double-buffered bf16
                + 2 * H * tv_ * 2        # streamed W slab, double-buffered bf16
                + 2 * tv_ * 4            # streamed bias slab, double-buffered f32
                + 4 * tm_ * tv_ * 4      # live (TM,TV) f32 temps (logits/exp/select)
                + 2 * 2 * tm_ * 4        # target + mask tiles
                + 3 * tm_ * 4            # online-softmax scratch
                + 2 * 8 * 128 * 4)       # partial-sum output block

    while usage(tm, tv) > budget and tv > 128:
        tv = max(128, _round_up(tv // 2, 128))
    while usage(tm, tv) > budget and tm > 256:
        tm = max(256, _round_up(tm // 2, 256))
    return tm, tv


def _nll_kernel(h_ref, w_ref, b_ref, tgt_ref, mask_ref, part_ref,
                m_sc, s_sc, t_sc, *, tv):
    """One (TM, TV) block of the vocab sweep for one token tile.

    h_ref:    (TM, H)      bf16  hidden-state tile (resident across the V sweep)
    w_ref:    (H, TV)      bf16  streamed vocab-projection slab
    b_ref:    (1, TV)      f32   streamed bias slab (-1e30 on padded columns)
    tgt_ref:  (TM, 1)      i32   global target token ids
    mask_ref: (TM, 1)      f32   0/1 validity mask (pad rows = 0)
    part_ref: (1, 8, 128)  f32   per-tile partials: [0,0,0]=sum nll, [0,0,1]=count
    m_sc/s_sc/t_sc: (TM,1) f32   running max / sum-exp / target-logit
    """
    k = pl.program_id(1)

    @pl.when(k == 0)
    def _init():
        m_sc[...] = jnp.full_like(m_sc, -jnp.inf)
        s_sc[...] = jnp.zeros_like(s_sc)
        t_sc[...] = jnp.zeros_like(t_sc)

    # (TM, TV) logit block on the MXU: bf16 x bf16 -> f32 accumulation.
    logits = jnp.dot(h_ref[...], w_ref[...],
                     preferred_element_type=jnp.float32) + b_ref[...]

    # Online logsumexp over the streamed vocab axis.
    m_prev = m_sc[...]
    m_new = jnp.maximum(m_prev, jnp.max(logits, axis=-1, keepdims=True))
    alpha = jnp.exp(m_prev - m_new)
    p = jnp.exp(logits - m_new)
    s_sc[...] = alpha * s_sc[...] + jnp.sum(p, axis=-1, keepdims=True)
    m_sc[...] = m_new

    # Target-logit gather with *global* column ids (one-hot compare); only the
    # block containing the target contributes a nonzero term, so a plain running
    # sum is exact.  Padded columns (global id >= V) can never match.
    col = k * tv + lax.broadcasted_iota(jnp.int32, logits.shape, 1)
    t_sc[...] += jnp.sum(jnp.where(col == tgt_ref[...], logits, 0.0),
                         axis=-1, keepdims=True)

    @pl.when(k == pl.num_programs(1) - 1)
    def _finalize():
        lse = m_sc[...] + jnp.log(s_sc[...])
        mask = mask_ref[...]
        nll_sum = jnp.sum(mask * (lse - t_sc[...]))
        msk_sum = jnp.sum(mask)
        # Pack the two per-tile scalars into a lane-aligned (1, 8, 128) tile so
        # the output block shape satisfies the (8, 128) tiling constraint and the
        # M axis can be "parallel" (no shared accumulator, no cross-core race).
        c = lax.broadcasted_iota(jnp.int32, part_ref.shape, 2)
        part_ref[...] = jnp.where(c == 0, nll_sum,
                                  jnp.where(c == 1, msk_sum, 0.0))


def masked_nll_pallas(hidden, w, b, tgt, mask, *, tm, tv, vmem_limit):
    """hidden:(M,H) bf16, w:(H,V) bf16, b:(1,V) f32, tgt:(M,1) i32, mask:(M,1) f32.

    Returns (num, den): masked NLL sum and masked-position count.
    """
    M, H = hidden.shape
    V = w.shape[1]

    m_pad = _round_up(M, tm)
    v_pad = _round_up(V, tv)

    if m_pad != M:
        pad = m_pad - M
        hidden = jnp.pad(hidden, ((0, pad), (0, 0)))
        tgt = jnp.pad(tgt, ((0, pad), (0, 0)))
        mask = jnp.pad(mask, ((0, pad), (0, 0)))          # pad rows carry mask == 0
    if v_pad != V:
        pad_v = v_pad - V
        w = jnp.pad(w, ((0, 0), (0, pad_v)))
        # padded vocab columns: huge negative bias so exp() underflows to 0 and
        # they never perturb the logsumexp.
        b = jnp.pad(b, ((0, 0), (0, pad_v)), constant_values=_NEG_BIG)

    grid = (m_pad // tm, v_pad // tv)

    parts = pl.pallas_call(
        functools.partial(_nll_kernel, tv=tv),
        out_shape=jax.ShapeDtypeStruct((grid[0], 8, 128), jnp.float32),
        grid_spec=pltpu.PrefetchScalarGridSpec(
            num_scalar_prefetch=0,
            grid=grid,
            in_specs=[
                pl.BlockSpec((tm, H), lambda i, k: (i, 0)),   # hidden tile
                pl.BlockSpec((H, tv), lambda i, k: (0, k)),   # streamed W slab
                pl.BlockSpec((1, tv), lambda i, k: (0, k)),   # streamed bias slab
                pl.BlockSpec((tm, 1), lambda i, k: (i, 0)),   # targets
                pl.BlockSpec((tm, 1), lambda i, k: (i, 0)),   # mask
            ],
            out_specs=pl.BlockSpec((1, 8, 128), lambda i, k: (i, 0, 0)),
            scratch_shapes=[
                pltpu.VMEM((tm, 1), jnp.float32),   # running max
                pltpu.VMEM((tm, 1), jnp.float32),   # running sum-exp
                pltpu.VMEM((tm, 1), jnp.float32),   # running target logit
            ],
        ),
        compiler_params=pltpu.CompilerParams(
            # M-tiles are independent (per-tile partial sums) -> "parallel" lets
            # v7x megacore split them across both TensorCores; the vocab sweep is
            # the sequential reduction axis and stays innermost / "arbitrary".
            dimension_semantics=("parallel", "arbitrary"),
            vmem_limit_bytes=int(vmem_limit),
        ),
    )(hidden, w, b, tgt, mask)

    num = jnp.sum(parts[:, 0, 0])
    den = jnp.sum(parts[:, 0, 1])
    return num, den


class TOPICModelPallas:
    """JAX/Pallas reimplementation of TOPICModel.forward with a synthetic LM head."""

    def __init__(self, vocab_size, n_embd, key, tm_max=512, tv_max=2048):
        self.vocab_size = vocab_size
        self.n_embd = n_embd
        self.tm_max = tm_max
        self.tv_max = tv_max
        self.vmem_budget = _vmem_budget_bytes()
        k0, k1, k2 = jax.random.split(key, 3)
        # deterministic synthetic parameters (stand-in for the external lm_model).
        # emb / w_head stored in bf16: halves HBM traffic and feeds the MXU at
        # bf16 rate (f32 accumulation in-kernel).
        self.emb = (jax.random.normal(k0, (vocab_size, n_embd), jnp.float32)
                    * 0.02).astype(jnp.bfloat16)
        self.w_head = (jax.random.normal(k1, (n_embd, vocab_size), jnp.float32)
                       * 0.02).astype(jnp.bfloat16)
        self.b_head = jax.random.normal(k2, (1, vocab_size), jnp.float32) * 0.02

    @functools.partial(jax.jit, static_argnums=0)
    def forward(self, input_ids, masks):
        # input_ids: (B, T) int32, masks: (B, T) float32
        B, T = input_ids.shape
        M = B * (T - 1)
        tm, tv = _choose_tiles(M, self.n_embd, self.vocab_size, self.vmem_budget,
                               self.tm_max, self.tv_max)

        # --- glue: synthetic lm_model front-end (bf16 embedding lookup) ---
        # TODO(synk): fuse this row-gather into the kernel (scalar-prefetched ids
        # + manual DMA gather) to avoid materializing `hidden` (M, H) in HBM.
        hidden = jnp.take(self.emb, input_ids[:, :-1], axis=0)
        hidden = hidden.reshape(M, self.n_embd)
        tgt = input_ids[:, 1:].reshape(M, 1).astype(jnp.int32)
        msk = masks[:, 1:].reshape(M, 1).astype(jnp.float32)

        # --- Pallas hot path: vocab matmul + online logsumexp + masked NLL ---
        num, den = masked_nll_pallas(hidden, self.w_head, self.b_head, tgt, msk,
                                     tm=tm, tv=tv, vmem_limit=self.vmem_budget)
        # NOTE: if every position is masked this returns `num` (den clamped to 1),
        # which differs from torch's degenerate NaN; harmless for 0/1 masks with
        # at least one valid token.
        loss = num / jnp.maximum(den, 1.0)
        kl_loss = jnp.float32(0.0)           # kl_scale=0 path in the reference module
        return loss, kl_loss

    def __call__(self, input_ids, masks):
        loss, _ = self.forward(input_ids, masks)
        print_ce_loss = jax.device_get(loss)   # mirrors loss.data.cpu().numpy()
        print_kl_loss = 0
        return loss, print_ce_loss, print_kl_loss


def _reference(model, input_ids, masks):
    """Plain-JAX reference of the same forward (same bf16 params, f32 math)."""
    hidden = jnp.take(model.emb, input_ids[:, :-1], axis=0).astype(jnp.float32)
    w = model.w_head.astype(jnp.float32)
    logits = jnp.dot(hidden, w, precision=lax.Precision.HIGHEST) + model.b_head[0]
    logprob = jax.nn.log_softmax(logits, axis=-1)
    tgt = input_ids[:, 1:]
    sel = jnp.take_along_axis(logprob, tgt[..., None], axis=-1)[..., 0]
    m = masks[:, 1:].astype(jnp.float32)
    return -(sel * m).sum() / jnp.maximum(m.sum(), 1.0)


if __name__ == "__main__":
    key = jax.random.PRNGKey(0)
    k_model, k_ids, k_mask = jax.random.split(key, 3)

    B, T, H, V = 2, 8, 32, 128  # small shapes consistent with the forward
    model = TOPICModelPallas(vocab_size=V, n_embd=H, key=k_model)

    input_ids = jax.random.randint(k_ids, (B, T), 0, V, dtype=jnp.int32)
    masks = (jax.random.uniform(k_mask, (B, T)) > 0.2).astype(jnp.float32)
    masks = masks.at[:, 1].set(1.0)  # guarantee at least one unmasked target/row

    loss, print_ce_loss, print_kl_loss = model(input_ids, masks)
    jax.block_until_ready(loss)

    ref = _reference(model, input_ids, masks)
    assert jnp.isfinite(loss), loss
    assert jnp.allclose(loss, ref, rtol=1e-3, atol=1e-3), (loss, ref)

    print("KERNEL_OK")
</pallas_src>

<mosaic_0001>
module attributes {stable_mosaic.version = 11 : i64} {
  func.func @_nll_kernel(%arg0: i32, %arg1: i32, %arg2: memref<256x32xbf16, #tpu.memory_space<vmem>>, %arg3: memref<32x128xbf16, #tpu.memory_space<vmem>>, %arg4: memref<1x128xf32, #tpu.memory_space<vmem>>, %arg5: memref<256x1xi32, #tpu.memory_space<vmem>>, %arg6: memref<256x1xf32, #tpu.memory_space<vmem>>, %arg7: memref<1x8x128xf32, #tpu.memory_space<vmem>>, %arg8: memref<256x1xf32, #tpu.memory_space<vmem>>, %arg9: memref<256x1xf32, #tpu.memory_space<vmem>>, %arg10: memref<256x1xf32, #tpu.memory_space<vmem>>) attributes {dimension_semantics = [#tpu.dimension_semantics<parallel>, #tpu.dimension_semantics<arbitrary>], iteration_bounds = array<i64: 1, 1>, scalar_prefetch = 0 : i64, scratch_operands = 3 : i64, tpu.core_type = #tpu.core_type<tc>, window_params = [{transform_indices = @transform_0, window_bounds = array<i64: 256, 32>}, {transform_indices = @transform_1, window_bounds = array<i64: 32, 128>}, {transform_indices = @transform_2, window_bounds = array<i64: 1, 128>}, {transform_indices = @transform_3, window_bounds = array<i64: 256, 1>}, {transform_indices = @transform_4, window_bounds = array<i64: 256, 1>}, {transform_indices = @transform_5, window_bounds = array<i64: 1, 8, 128>}]} {
    %c0_i32 = arith.constant 0 : i32
    %0 = arith.cmpi eq, %arg1, %c0_i32 : i32
    %1 = arith.extui %0 : i1 to i32
    %c0_i32_0 = arith.constant 0 : i32
    %2 = arith.cmpi ne, %1, %c0_i32_0 : i32
    scf.if %2 {
      %cst_26 = arith.constant 0xFF800000 : f32
      %42 = vector.broadcast %cst_26 : f32 to vector<256x1xf32>
      %c0_27 = arith.constant 0 : index
      %c0_28 = arith.constant 0 : index
      %43 = vector.load %arg8[%c0_27, %c0_28] : memref<256x1xf32, #tpu.memory_space<vmem>>, vector<256x1xf32>
      tpu.vector_store %arg8[%c0_27, %c0_28], %42 {strides = array<i32>} : memref<256x1xf32, #tpu.memory_space<vmem>>, vector<256x1xf32>,
      %cst_29 = arith.constant 0.000000e+00 : f32
      %44 = vector.broadcast %cst_29 : f32 to vector<256x1xf32>
      %c0_30 = arith.constant 0 : index
      %c0_31 = arith.constant 0 : index
      %45 = vector.load %arg9[%c0_30, %c0_31] : memref<256x1xf32, #tpu.memory_space<vmem>>, vector<256x1xf32>
      tpu.vector_store %arg9[%c0_30, %c0_31], %44 {strides = array<i32>} : memref<256x1xf32, #tpu.memory_space<vmem>>, vector<256x1xf32>,
      %cst_32 = arith.constant 0.000000e+00 : f32
      %46 = vector.broadcast %cst_32 : f32 to vector<256x1xf32>
      %c0_33 = arith.constant 0 : index
      %c0_34 = arith.constant 0 : index
      %47 = vector.load %arg10[%c0_33, %c0_34] : memref<256x1xf32, #tpu.memory_space<vmem>>, vector<256x1xf32>
      tpu.vector_store %arg10[%c0_33, %c0_34], %46 {strides = array<i32>} : memref<256x1xf32, #tpu.memory_space<vmem>>, vector<256x1xf32>,
    } else {
    }
    %c0 = arith.constant 0 : index
    %c0_1 = arith.constant 0 : index
    %3 = vector.load %arg2[%c0, %c0_1] : memref<256x32xbf16, #tpu.memory_space<vmem>>, vector<256x32xbf16>
    %c0_2 = arith.constant 0 : index
    %c0_3 = arith.constant 0 : index
    %4 = vector.load %arg3[%c0_2, %c0_3] : memref<32x128xbf16, #tpu.memory_space<vmem>>, vector<32x128xbf16>
    %cst = arith.constant dense<0.000000e+00> : vector<256x128xf32>
    %5 = tpu.matmul %3, %4, %cst {dimension_numbers = #tpu.dot_dimension_numbers<[1], [0], [0], [1], [0, 0, 1, 1], [], []>} : vector<256x32xbf16>, vector<32x128xbf16>, vector<256x128xf32> -> vector<256x128xf32>
    %c0_4 = arith.constant 0 : index
    %c0_5 = arith.constant 0 : index
    %6 = vector.load %arg4[%c0_4, %c0_5] : memref<1x128xf32, #tpu.memory_space<vmem>>, vector<1x128xf32>
    %7 = vector.broadcast %6 : vector<1x128xf32> to vector<256x128xf32>
    %8 = arith.addf %5, %7 : vector<256x128xf32>
    %c0_6 = arith.constant 0 : index
    %c0_7 = arith.constant 0 : index
    %9 = vector.load %arg8[%c0_6, %c0_7] : memref<256x1xf32, #tpu.memory_space<vmem>>, vector<256x1xf32>
    %cst_8 = arith.constant dense<0xFF800000> : vector<256xf32>
    %10 = vector.multi_reduction <maximumf>, %8, %cst_8 [1] : vector<256x128xf32> to vector<256xf32>
    %11 = vector.shape_cast %10 : vector<256xf32> to vector<256x1xf32>
    %12 = arith.maximumf %9, %11 : vector<256x1xf32>
    %13 = arith.subf %9, %12 : vector<256x1xf32>
    %14 = math.exp %13 : vector<256x1xf32>
    %15 = vector.broadcast %12 : vector<256x1xf32> to vector<256x128xf32>
    %16 = arith.subf %8, %15 : vector<256x128xf32>
    %17 = math.exp %16 : vector<256x128xf32>
    %c0_9 = arith.constant 0 : index
    %c0_10 = arith.constant 0 : index
    %18 = vector.load %arg9[%c0_9, %c0_10] : memref<256x1xf32, #tpu.memory_space<vmem>>, vector<256x1xf32>
    %19 = arith.mulf %14, %18 : vector<256x1xf32>
    %cst_11 = arith.constant dense<0.000000e+00> : vector<256xf32>
    %20 = vector.multi_reduction <add>, %17, %cst_11 [1] : vector<256x128xf32> to vector<256xf32>
    %21 = vector.shape_cast %20 : vector<256xf32> to vector<256x1xf32>
    %22 = arith.addf %19, %21 : vector<256x1xf32>
    %c0_12 = arith.constant 0 : index
    %c0_13 = arith.constant 0 : index
    %23 = vector.load %arg9[%c0_12, %c0_13] : memref<256x1xf32, #tpu.memory_space<vmem>>, vector<256x1xf32>
    tpu.vector_store %arg9[%c0_12, %c0_13], %22 {strides = array<i32>} : memref<256x1xf32, #tpu.memory_space<vmem>>, vector<256x1xf32>,
    %c0_14 = arith.constant 0 : index
    %c0_15 = arith.constant 0 : index
    %24 = vector.load %arg8[%c0_14, %c0_15] : memref<256x1xf32, #tpu.memory_space<vmem>>, vector<256x1xf32>
    tpu.vector_store %arg8[%c0_14, %c0_15], %12 {strides = array<i32>} : memref<256x1xf32, #tpu.memory_space<vmem>>, vector<256x1xf32>,
    %c128_i32 = arith.constant 128 : i32
    %25 = arith.muli %arg1, %c128_i32 : i32
    %26 = tpu.iota {dimensions = array<i32: 1>} : vector<256x128xi32>
    %27 = vector.broadcast %25 : i32 to vector<256x128xi32>
    %28 = arith.addi %27, %26 : vector<256x128xi32>
    %c0_16 = arith.constant 0 : index
    %c0_17 = arith.constant 0 : index
    %29 = vector.load %arg10[%c0_16, %c0_17] : memref<256x1xf32, #tpu.memory_space<vmem>>, vector<256x1xf32>
    %c0_18 = arith.constant 0 : index
    %c0_19 = arith.constant 0 : index
    %30 = vector.load %arg5[%c0_18, %c0_19] : memref<256x1xi32, #tpu.memory_space<vmem>>, vector<256x1xi32>
    %31 = vector.broadcast %30 : vector<256x1xi32> to vector<256x128xi32>
    %32 = arith.cmpi eq, %28, %31 : vector<256x128xi32>
    %cst_20 = arith.constant 0.000000e+00 : f32
    %33 = vector.broadcast %cst_20 : f32 to vector<256x128xf32>
    %34 = arith.select %32, %8, %33 : vector<256x128xi1>, vector<256x128xf32>
    %cst_21 = arith.constant dense<0.000000e+00> : vector<256xf32>
    %35 = vector.multi_reduction <add>, %34, %cst_21 [1] : vector<256x128xf32> to vector<256xf32>
    %36 = vector.shape_cast %35 : vector<256xf32> to vector<256x1xf32>
    %37 = arith.addf %29, %36 : vector<256x1xf32>
    %c0_22 = arith.constant 0 : index
    %c0_23 = arith.constant 0 : index
    %38 = vector.load %arg10[%c0_22, %c0_23] : memref<256x1xf32, #tpu.memory_space<vmem>>, vector<256x1xf32>
    tpu.vector_store %arg10[%c0_22, %c0_23], %37 {strides = array<i32>} : memref<256x1xf32, #tpu.memory_space<vmem>>, vector<256x1xf32>,
    %c0_i32_24 = arith.constant 0 : i32
    %39 = arith.cmpi eq, %arg1, %c0_i32_24 : i32
    %40 = arith.extui %39 : i1 to i32
    %c0_i32_25 = arith.constant 0 : i32
    %41 = arith.cmpi ne, %40, %c0_i32_25 : i32
    scf.if %41 {
      %c0_26 = arith.constant 0 : index
      %c0_27 = arith.constant 0 : index
      %42 = vector.load %arg8[%c0_26, %c0_27] : memref<256x1xf32, #tpu.memory_space<vmem>>, vector<256x1xf32>
      %c0_28 = arith.constant 0 : index
      %c0_29 = arith.constant 0 : index
      %43 = vector.load %arg9[%c0_28, %c0_29] : memref<256x1xf32, #tpu.memory_space<vmem>>, vector<256x1xf32>
      %44 = math.log %43 : vector<256x1xf32>
      %45 = arith.addf %42, %44 : vector<256x1xf32>
      %c0_30 = arith.constant 0 : index
      %c0_31 = arith.constant 0 : index
      %46 = vector.load %arg6[%c0_30, %c0_31] : memref<256x1xf32, #tpu.memory_space<vmem>>, vector<256x1xf32>
      %c0_32 = arith.constant 0 : index
      %c0_33 = arith.constant 0 : index
      %47 = vector.load %arg10[%c0_32, %c0_33] : memref<256x1xf32, #tpu.memory_space<vmem>>, vector<256x1xf32>
      %48 = arith.subf %45, %47 : vector<256x1xf32>
      %49 = arith.mulf %46, %48 : vector<256x1xf32>
      %50 = vector.shape_cast %49 : vector<256x1xf32> to vector<1x256x1xf32>
      %cst_34 = arith.constant dense<0.000000e+00> : vector<1xf32>
      %51 = vector.multi_reduction <add>, %50, %cst_34 [1, 2] : vector<1x256x1xf32> to vector<1xf32>
      %52 = vector.shape_cast %51 : vector<1xf32> to vector<1x1x1xf32>
      %53 = vector.extract %52[0, 0, 0] : f32 from vector<1x1x1xf32>
      %54 = vector.shape_cast %46 : vector<256x1xf32> to vector<1x256x1xf32>
      %cst_35 = arith.constant dense<0.000000e+00> : vector<1xf32>
      %55 = vector.multi_reduction <add>, %54, %cst_35 [1, 2] : vector<1x256x1xf32> to vector<1xf32>
      %56 = vector.shape_cast %55 : vector<1xf32> to vector<1x1x1xf32>
      %57 = vector.extract %56[0, 0, 0] : f32 from vector<1x1x1xf32>
      %58 = tpu.iota {dimensions = array<i32: 2>} : vector<1x8x128xi32>
      %c0_i32_36 = arith.constant 0 : i32
      %59 = vector.broadcast %c0_i32_36 : i32 to vector<1x8x128xi32>
      %60 = arith.cmpi eq, %58, %59 : vector<1x8x128xi32>
      %c1_i32 = arith.constant 1 : i32
      %61 = vector.broadcast %c1_i32 : i32 to vector<1x8x128xi32>
      %62 = arith.cmpi eq, %58, %61 : vector<1x8x128xi32>
      %cst_37 = arith.constant 0.000000e+00 : f32
      %63 = vector.broadcast %57 : f32 to vector<1x8x128xf32>
      %64 = vector.broadcast %cst_37 : f32 to vector<1x8x128xf32>
      %65 = arith.select %62, %63, %64 : vector<1x8x128xi1>, vector<1x8x128xf32>
      %66 = vector.broadcast %53 : f32 to vector<1x8x128xf32>
      %67 = arith.select %60, %66, %65 : vector<1x8x128xi1>, vector<1x8x128xf32>
      %c0_38 = arith.constant 0 : index
      %c0_39 = arith.constant 0 : index
      %c0_40 = arith.constant 0 : index
      %68 = vector.load %arg7[%c0_38, %c0_39, %c0_40] : memref<1x8x128xf32, #tpu.memory_space<vmem>>, vector<1x8x128xf32>
      tpu.vector_store %arg7[%c0_38, %c0_39, %c0_40], %67 {strides = array<i32>} : memref<1x8x128xf32, #tpu.memory_space<vmem>>, vector<1x8x128xf32>,
    } else {
    }
    return
  }
  func.func @transform_0(%arg0: i32, %arg1: i32) -> (i32, i32) {
    %c0_i32 = arith.constant 0 : i32
    %c0_i32_0 = arith.constant 0 : i32
    return %arg0, %c0_i32 : i32, i32
  }
  func.func @transform_1(%arg0: i32, %arg1: i32) -> (i32, i32) {
    %c0_i32 = arith.constant 0 : i32
    %c0_i32_0 = arith.constant 0 : i32
    return %c0_i32, %arg1 : i32, i32
  }
  func.func @transform_2(%arg0: i32, %arg1: i32) -> (i32, i32) {
    %c0_i32 = arith.constant 0 : i32
    %c0_i32_0 = arith.constant 0 : i32
    return %c0_i32, %arg1 : i32, i32
  }
  func.func @transform_3(%arg0: i32, %arg1: i32) -> (i32, i32) {
    %c0_i32 = arith.constant 0 : i32
    %c0_i32_0 = arith.constant 0 : i32
    return %arg0, %c0_i32 : i32, i32
  }
  func.func @transform_4(%arg0: i32, %arg1: i32) -> (i32, i32) {
    %c0_i32 = arith.constant 0 : i32
    %c0_i32_0 = arith.constant 0 : i32
    return %arg0, %c0_i32 : i32, i32
  }
  func.func @transform_5(%arg0: i32, %arg1: i32) -> (i32, i32, i32) {
    %c0_i32 = arith.constant 0 : i32
    %c0_i32_0 = arith.constant 0 : i32
    %c0_i32_1 = arith.constant 0 : i32
    return %arg0, %c0_i32, %c0_i32_0 : i32, i32, i32
  }
}

</mosaic_0001>

<bundles_post_ra>
// kernel: forward.1
= control target key start
LH: loop header
LB: loop body
LE: loop exit
PB: predicated region body
PF: predicated region fallthrough
CT: control target
= control target key end

     0   :  { %v2308_v1 = vmov 0   ;;  %vm257_vm0 = vcmask 261120   ;;  %vm25_vm1 = vcmask 7168   ;;  %v2309_v51 = vmov -inf   ;;  %s3794_s1 = inlined_call_operand.vmem [shape: bf16[32,128], index: 1, kind: input, shape index: {}]   ;;  %s3795_s0 = inlined_call_operand.vmem [shape: bf16[256,32], index: 0, kind: input, shape index: {}]   ;;  %s3796_s3 = inlined_call_operand.vmem [shape: s32[256,1], index: 3, kind: input, shape index: {}]   ;;  %s3797_s2 = inlined_call_operand.vmem [shape: f32[1,128], index: 2, kind: input, shape index: {}]   ;;  %s3798_s4 = inlined_call_operand.vmem [shape: f32[256,1], index: 4, kind: input, shape index: {}]   ;;  %s3799_s5 = inlined_call_operand.vmem [shape: f32[1,8,128], index: 5, kind: output, shape index: {}]  }
   0x1   :  { %v2077_v0 = vld [vmem:[%s3794_s1] sm:$0xff]   ;;  %2075 = vset.pattern.permute.xlu0 %v2308_v1  ;;  %2076 = vset.pattern.permute.xlu1 %v2308_v1  ;;  %v2078_v2 = vld [vmem:[%s3794_s1 + $0x8] sm:$0xff]   ;;  %v2083_v7 = vld [vmem:[%s3795_s0 + $0x10] sm:$0xff]   ;;  %44 = vst.msk [vmem:[#allocation2 + $0x90] sm:$0xff] %vm25_vm1, %v2309_v51 }
   0x2   :  { %2028 = vmatprep.subr.bf16.mxu0 %v2077_v0  ;;  %2064 = vmatprep.subr.bf16.mxu1 %v2077_v0  ;;  %v2079_v3 = vld [vmem:[%s3795_s0] sm:$0xff]   ;;  %v2081_v5 = vld [vmem:[%s3795_s0 + $0x8] sm:$0xff]   ;;  %v2084_v8 = vld [vmem:[%s3795_s0 + $0x50] sm:$0xff]   ;;  %26 = vst.msk [vmem:[#allocation2] sm:$0xff] %vm25_vm1, %v2309_v51 }
   0x3   :  { %2029 = vmatpush3.bf16.msra.mxu0 %v2077_v0  ;;  %2066 = vmatpush3.bf16.msra.mxu1 %v2077_v0  ;;  %v2080_v4 = vld [vmem:[%s3795_s0 + $0x40] sm:$0xff]   ;;  %v2082_v6 = vld [vmem:[%s3795_s0 + $0x48] sm:$0xff]   ;;  %v2085_v10 = vld [vmem:[%s3795_s0 + $0x18] sm:$0xff]   ;;  %27 = vst.msk [vmem:[#allocation2 + $0x8] sm:$0xff] %vm25_vm1, %v2309_v51 }
   0x4   :  { %2030 = vmatprep.subr.bf16.mxu0 %v2078_v2  ;;  %2065 = vmatprep.subr.bf16.mxu1 %v2078_v2  ;;  %v1209_v9 = vld [vmem:[%s3796_s3] sm:$0xff]  ;;  %v1211_v11 = vld [vmem:[%s3796_s3 + $0x10] sm:$0xff]  ;;  %v2086_v12 = vld [vmem:[%s3795_s0 + $0x58] sm:$0xff]   ;;  %28 = vst.msk [vmem:[#allocation2 + $0x10] sm:$0xff] %vm25_vm1, %v2309_v51 }
   0x5   :  { %2032 = vmatprep.mubr.msk.bf16.mxu0 %vm257_vm0, %v2079_v3  ;;  %2048 = vmatprep.mubr.msk.bf16.mxu1 %vm257_vm0, %v2080_v4  ;;  %v2087_v13 = vld [vmem:[%s3795_s0 + $0x20] sm:$0xff]   ;;  %v1215_v16 = vld [vmem:[%s3796_s3 + $0x30] sm:$0xff]  ;;  %v2089_v17 = vld [vmem:[%s3795_s0 + $0x28] sm:$0xff]   ;;  %29 = vst.msk [vmem:[#allocation2 + $0x18] sm:$0xff] %vm25_vm1, %v2309_v51 }
   0x6   :  { %1242 = vperm.xlu0 %2075, %v1209_v9   ;;  %v2088_v14 = vld [vmem:[%s3795_s0 + $0x60] sm:$0xff]   ;;  %v2090_v18 = vld [vmem:[%s3795_s0 + $0x68] sm:$0xff]   ;;  %v2091_v20 = vld [vmem:[%s3795_s0 + $0x30] sm:$0xff]   ;;  %30 = vst.msk [vmem:[#allocation2 + $0x20] sm:$0xff] %vm25_vm1, %v2309_v51 }
   0x7   :  { %2031 = vmatpush3.bf16.msra.mxu0 %v2078_v2  ;;  %2067 = vmatpush3.bf16.msra.mxu1 %v2078_v2  ;;  %v1213_v15 = vld [vmem:[%s3796_s3 + $0x20] sm:$0xff]  ;;  %v1210_v19 = vld [vmem:[%s3796_s3 + $0x8] sm:$0xff]  ;;  %v2092_v21 = vld [vmem:[%s3795_s0 + $0x70] sm:$0xff]   ;;  %31 = vst.msk [vmem:[#allocation2 + $0x28] sm:$0xff] %vm25_vm1, %v2309_v51  ;;  %v1173_v2 = vlaneseq }
   0x8   :  { %1245 = vperm.xlu1 %2076, %v1210_v19   ;;  %v1216_v22 = vld [vmem:[%s3796_s3 + $0x38] sm:$0xff]  ;;  %v1217_v24 = vld [vmem:[%s3796_s3 + $0x40] sm:$0xff]  ;;  %v1214_v25 = vld [vmem:[%s3796_s3 + $0x28] sm:$0xff]  ;;  %32 = vst.msk [vmem:[#allocation2 + $0x30] sm:$0xff] %vm25_vm1, %v2309_v51 }
   0x9   :  { %v1212_v23 = vld [vmem:[%s3796_s3 + $0x18] sm:$0xff]  ;;  %v1218_v28 = vld [vmem:[%s3796_s3 + $0x48] sm:$0xff]  ;;  %v1227_v29 = vld [vmem:[%s3796_s3 + $0x90] sm:$0xff]  ;;  %33 = vst.msk [vmem:[#allocation2 + $0x38] sm:$0xff] %vm25_vm1, %v2309_v51 }
   0xa   :  { %2033 = vmatmul.mubr.msk.bf16.vlgmr.msra.gmra.mrb[0].mxu0 %vm257_vm0, %v2081_v5  ;;  %2049 = vmatmul.mubr.msk.bf16.vlgmr.msra.gmra.mrb[0].mxu1 %vm257_vm0, %v2082_v6  ;;  %v2093_v26 = vld [vmem:[%s3795_s0 + $0x38] sm:$0xff]   ;;  %v1219_v30 = vld [vmem:[%s3796_s3 + $0x50] sm:$0xff]  ;;  %v1229_v31 = vld [vmem:[%s3796_s3 + $0xa0] sm:$0xff]  ;;  %34 = vst.msk [vmem:[#allocation2 + $0x40] sm:$0xff] %vm25_vm1, %v2309_v51  ;;  %v2564_v6 = vand.u32 127, %v1173_v2 }
   0xb   :  { %2036 = vmatprep.mubr.msk.bf16.mxu0 %vm257_vm0, %v2083_v7  ;;  %2052 = vmatprep.mubr.msk.bf16.mxu1 %vm257_vm0, %v2084_v8  ;;  %v2094_v27 = vld [vmem:[%s3795_s0 + $0x78] sm:$0xff]   ;;  %v1231_v33 = vld [vmem:[%s3796_s3 + $0xb0] sm:$0xff]  ;;  %v1221_v34 = vld [vmem:[%s3796_s3 + $0x60] sm:$0xff]  ;;  %35 = vst.msk [vmem:[#allocation2 + $0x48] sm:$0xff] %vm25_vm1, %v2309_v51 }
   0xc   :  { %1248 = vperm.xlu0 %2075, %v1211_v11   ;;  %1251 = vperm.xlu1 %2076, %v1212_v23   ;;  %v1220_v32 = vld [vmem:[%s3796_s3 + $0x58] sm:$0xff]  ;;  %v1233_v35 = vld [vmem:[%s3796_s3 + $0xc0] sm:$0xff]  ;;  %v1222_v36 = vld [vmem:[%s3796_s3 + $0x68] sm:$0xff]  ;;  %36 = vst.msk [vmem:[#allocation2 + $0x50] sm:$0xff] %vm25_vm1, %v2309_v51 }
   0xd   :  { %v1235_v37 = vld [vmem:[%s3796_s3 + $0xd0] sm:$0xff]  ;;  %v1237_v39 = vld [vmem:[%s3796_s3 + $0xe0] sm:$0xff]  ;;  %v1224_v40 = vld [vmem:[%s3796_s3 + $0x78] sm:$0xff]  ;;  %37 = vst.msk [vmem:[#allocation2 + $0x58] sm:$0xff] %vm25_vm1, %v2309_v51 }
   0xe   :  { %v1223_v38 = vld [vmem:[%s3796_s3 + $0x70] sm:$0xff]  ;;  %v1238_v41 = vld [vmem:[%s3796_s3 + $0xe8] sm:$0xff]  ;;  %v1225_v42 = vld [vmem:[%s3796_s3 + $0x80] sm:$0xff]  ;;  %38 = vst.msk [vmem:[#allocation2 + $0x60] sm:$0xff] %vm25_vm1, %v2309_v51 }
   0xf   :  { %v1240_v43 = vld [vmem:[%s3796_s3 + $0xf8] sm:$0xff]  ;;  %v1226_v44 = vld [vmem:[%s3796_s3 + $0x88] sm:$0xff]  ;;  %v1239_v50 = vld [vmem:[%s3796_s3 + $0xf0] sm:$0xff]  ;;  %39 = vst.msk [vmem:[#allocation2 + $0x68] sm:$0xff] %vm25_vm1, %v2309_v51 }
  0x10   :  { %1254 = vperm.xlu0 %2075, %v1213_v15   ;;  %1257 = vperm.xlu1 %2076, %v1214_v25   ;;  %v1228_v45 = vld [vmem:[%s3796_s3 + $0x98] sm:$0xff]  ;;  %v1230_v46 = vld [vmem:[%s3796_s3 + $0xa8] sm:$0xff]  ;;  %40 = vst.msk [vmem:[#allocation2 + $0x70] sm:$0xff] %vm25_vm1, %v2309_v51  ;;  %41 = vst.msk [vmem:[#allocation2 + $0x78] sm:$0xff] %vm25_vm1, %v2309_v51 }
  0x11   :  { %v1232_v47 = vld [vmem:[%s3796_s3 + $0xb8] sm:$0xff]  ;;  %v1234_v48 = vld [vmem:[%s3796_s3 + $0xc8] sm:$0xff]  ;;  %42 = vst.msk [vmem:[#allocation2 + $0x80] sm:$0xff] %vm25_vm1, %v2309_v51  ;;  %43 = vst.msk [vmem:[#allocation2 + $0x88] sm:$0xff] %vm25_vm1, %v2309_v51 }
  0x12   :  { %2037 = vmatmul.mubr.msk.bf16.gmra.mrb[4].mxu0 %vm257_vm0, %v2085_v10  ;;  %2053 = vmatmul.mubr.msk.bf16.gmra.mrb[4].mxu1 %vm257_vm0, %v2086_v12  ;;  %v1236_v49 = vld [vmem:[%s3796_s3 + $0xd8] sm:$0xff]  ;;  %45 = vst.msk [vmem:[#allocation2 + $0x98] sm:$0xff] %vm25_vm1, %v2309_v51  ;;  %46 = vst.msk [vmem:[#allocation2 + $0xa0] sm:$0xff] %vm25_vm1, %v2309_v51  ;;  %v2542_v52 = vld [vmem:[%s3797_s2] ss:$0 sm:$0xff] }
  0x13   :  { %2040 = vmatprep.mubr.msk.bf16.mxu0 %vm257_vm0, %v2087_v13  ;;  %2056 = vmatprep.mubr.msk.bf16.mxu1 %vm257_vm0, %v2088_v14  ;;  %47 = vst.msk [vmem:[#allocation2 + $0xa8] sm:$0xff] %vm25_vm1, %v2309_v51  ;;  %48 = vst.msk [vmem:[#allocation2 + $0xb0] sm:$0xff] %vm25_vm1, %v2309_v51 }
  0x14   :  { %1260 = vperm.xlu0 %2075, %v1215_v16   ;;  %1296 = vperm.xlu1 %2076, %v1227_v29   ;;  %49 = vst.msk [vmem:[#allocation2 + $0xb8] sm:$0xff] %vm25_vm1, %v2309_v51  ;;  %50 = vst.msk [vmem:[#allocation2 + $0xc0] sm:$0xff] %vm25_vm1, %v2309_v51 }
  0x15   :  { %51 = vst.msk [vmem:[#allocation2 + $0xc8] sm:$0xff] %vm25_vm1, %v2309_v51  ;;  %52 = vst.msk [vmem:[#allocation2 + $0xd0] sm:$0xff] %vm25_vm1, %v2309_v51 }
  0x16   :  { %53 = vst.msk [vmem:[#allocation2 + $0xd8] sm:$0xff] %vm25_vm1, %v2309_v51  ;;  %54 = vst.msk [vmem:[#allocation2 + $0xe0] sm:$0xff] %vm25_vm1, %v2309_v51 }
  0x17   :  { %55 = vst.msk [vmem:[#allocation2 + $0xe8] sm:$0xff] %vm25_vm1, %v2309_v51  ;;  %56 = vst.msk [vmem:[#allocation2 + $0xf0] sm:$0xff] %vm25_vm1, %v2309_v51 }
  0x18   :  { %1263 = vperm.xlu0 %2075, %v1216_v22   ;;  %1302 = vperm.xlu1 %2076, %v1229_v31   ;;  %57 = vst.msk [vmem:[#allocation2 + $0xf8] sm:$0xff] %vm25_vm1, %v2309_v51 }
  0x1a   :  { %2041 = vmatmul.mubr.msk.bf16.gmra.mrb[8].mxu0 %vm257_vm0, %v2089_v17  ;;  %2057 = vmatmul.mubr.msk.bf16.gmra.mrb[8].mxu1 %vm257_vm0, %v2090_v18 }
  0x1b   :  { %2044 = vmatprep.mubr.msk.bf16.mxu0 %vm257_vm0, %v2091_v20  ;;  %2060 = vmatprep.mubr.msk.bf16.mxu1 %vm257_vm0, %v2092_v21 }
  0x1c   :  { %1266 = vperm.xlu0 %2075, %v1217_v24   ;;  %1308 = vperm.xlu1 %2076, %v1231_v33   ;;  %v2310_v33 = vmov 0.0  }
  0x1d   :  { %92 = vst.msk [vmem:[#allocation4 + $0x10] sm:$0xff] %vm25_vm1, %v2310_v33  ;;  %58 = vst.msk [vmem:[#allocation3] sm:$0xff] %vm25_vm1, %v2310_v33 }
  0x1e   :  { %59 = vst.msk [vmem:[#allocation3 + $0x8] sm:$0xff] %vm25_vm1, %v2310_v33  ;;  %60 = vst.msk [vmem:[#allocation3 + $0x10] sm:$0xff] %vm25_vm1, %v2310_v33 }
  0x1f   :  { %61 = vst.msk [vmem:[#allocation3 + $0x18] sm:$0xff] %vm25_vm1, %v2310_v33  ;;  %62 = vst.msk [vmem:[#allocation3 + $0x20] sm:$0xff] %vm25_vm1, %v2310_v33 }
  0x20   :  { %1269 = vperm.xlu0 %2075, %v1218_v28   ;;  %1314 = vperm.xlu1 %2076, %v1233_v35   ;;  %63 = vst.msk [vmem:[#allocation3 + $0x28] sm:$0xff] %vm25_vm1, %v2310_v33  ;;  %64 = vst.msk [vmem:[#allocation3 + $0x30] sm:$0xff] %vm25_vm1, %v2310_v33 }
  0x21   :  { %65 = vst.msk [vmem:[#allocation3 + $0x38] sm:$0xff] %vm25_vm1, %v2310_v33  ;;  %66 = vst.msk [vmem:[#allocation3 + $0x40] sm:$0xff] %vm25_vm1, %v2310_v33 }
  0x22   :  { %2045 = vmatmul.mubr.msk.bf16.gmra.mrb[12].mxu0 %vm257_vm0, %v2093_v26  ;;  %2061 = vmatmul.mubr.msk.bf16.gmra.mrb[12].mxu1 %vm257_vm0, %v2094_v27  ;;  %67 = vst.msk [vmem:[#allocation3 + $0x48] sm:$0xff] %vm25_vm1, %v2310_v33  ;;  %68 = vst.msk [vmem:[#allocation3 + $0x50] sm:$0xff] %vm25_vm1, %v2310_v33 }
  0x23   :  { %69 = vst.msk [vmem:[#allocation3 + $0x58] sm:$0xff] %vm25_vm1, %v2310_v33  ;;  %70 = vst.msk [vmem:[#allocation3 + $0x60] sm:$0xff] %vm25_vm1, %v2310_v33 }
  0x24   :  { %1272 = vperm.xlu0 %2075, %v1219_v30   ;;  %1320 = vperm.xlu1 %2076, %v1235_v37   ;;  %71 = vst.msk [vmem:[#allocation3 + $0x68] sm:$0xff] %vm25_vm1, %v2310_v33  ;;  %72 = vst.msk [vmem:[#allocation3 + $0x70] sm:$0xff] %vm25_vm1, %v2310_v33 }
  0x25   :  { %73 = vst.msk [vmem:[#allocation3 + $0x78] sm:$0xff] %vm25_vm1, %v2310_v33  ;;  %74 = vst.msk [vmem:[#allocation3 + $0x80] sm:$0xff] %vm25_vm1, %v2310_v33 }
  0x26   :  { %75 = vst.msk [vmem:[#allocation3 + $0x88] sm:$0xff] %vm25_vm1, %v2310_v33  ;;  %76 = vst.msk [vmem:[#allocation3 + $0x90] sm:$0xff] %vm25_vm1, %v2310_v33 }
  0x27   :  { %77 = vst.msk [vmem:[#allocation3 + $0x98] sm:$0xff] %vm25_vm1, %v2310_v33  ;;  %78 = vst.msk [vmem:[#allocation3 + $0xa0] sm:$0xff] %vm25_vm1, %v2310_v33 }
  0x28   :  { %1275 = vperm.xlu0 %2075, %v1220_v32   ;;  %1326 = vperm.xlu1 %2076, %v1237_v39   ;;  %79 = vst.msk [vmem:[#allocation3 + $0xa8] sm:$0xff] %vm25_vm1, %v2310_v33  ;;  %80 = vst.msk [vmem:[#allocation3 + $0xb0] sm:$0xff] %vm25_vm1, %v2310_v33 }
  0x29   :  { %81 = vst.msk [vmem:[#allocation3 + $0xb8] sm:$0xff] %vm25_vm1, %v2310_v33  ;;  %82 = vst.msk [vmem:[#allocation3 + $0xc0] sm:$0xff] %vm25_vm1, %v2310_v33 }
  0x2a   :  { %83 = vst.msk [vmem:[#allocation3 + $0xc8] sm:$0xff] %vm25_vm1, %v2310_v33  ;;  %84 = vst.msk [vmem:[#allocation3 + $0xd0] sm:$0xff] %vm25_vm1, %v2310_v33 }
  0x2b   :  { %85 = vst.msk [vmem:[#allocation3 + $0xd8] sm:$0xff] %vm25_vm1, %v2310_v33  ;;  %86 = vst.msk [vmem:[#allocation3 + $0xe0] sm:$0xff] %vm25_vm1, %v2310_v33 }
  0x2c   :  { %1278 = vperm.xlu0 %2075, %v1221_v34   ;;  %1329 = vperm.xlu1 %2076, %v1238_v41   ;;  %87 = vst.msk [vmem:[#allocation3 + $0xe8] sm:$0xff] %vm25_vm1, %v2310_v33  ;;  %88 = vst.msk [vmem:[#allocation3 + $0xf0] sm:$0xff] %vm25_vm1, %v2310_v33 }
  0x2d   :  { %89 = vst.msk [vmem:[#allocation3 + $0xf8] sm:$0xff] %vm25_vm1, %v2310_v33  ;;  %90 = vst.msk [vmem:[#allocation4] sm:$0xff] %vm25_vm1, %v2310_v33 }
  0x2e   :  { %91 = vst.msk [vmem:[#allocation4 + $0x8] sm:$0xff] %vm25_vm1, %v2310_v33  ;;  %93 = vst.msk [vmem:[#allocation4 + $0x18] sm:$0xff] %vm25_vm1, %v2310_v33 }
  0x2f   :  { %94 = vst.msk [vmem:[#allocation4 + $0x20] sm:$0xff] %vm25_vm1, %v2310_v33  ;;  %95 = vst.msk [vmem:[#allocation4 + $0x28] sm:$0xff] %vm25_vm1, %v2310_v33 }
  0x30   :  { %1281 = vperm.xlu0 %2075, %v1222_v36   ;;  %1335 = vperm.xlu1 %2076, %v1240_v43   ;;  %96 = vst.msk [vmem:[#allocation4 + $0x30] sm:$0xff] %vm25_vm1, %v2310_v33  ;;  %97 = vst.msk [vmem:[#allocation4 + $0x38] sm:$0xff] %vm25_vm1, %v2310_v33 }
  0x31   :  { %98 = vst.msk [vmem:[#allocation4 + $0x40] sm:$0xff] %vm25_vm1, %v2310_v33  ;;  %99 = vst.msk [vmem:[#allocation4 + $0x48] sm:$0xff] %vm25_vm1, %v2310_v33 }
  0x32   :  { %100 = vst.msk [vmem:[#allocation4 + $0x50] sm:$0xff] %vm25_vm1, %v2310_v33  ;;  %101 = vst.msk [vmem:[#allocation4 + $0x58] sm:$0xff] %vm25_vm1, %v2310_v33 }
  0x33   :  { %102 = vst.msk [vmem:[#allocation4 + $0x60] sm:$0xff] %vm25_vm1, %v2310_v33  ;;  %103 = vst.msk [vmem:[#allocation4 + $0x68] sm:$0xff] %vm25_vm1, %v2310_v33 }
  0x34   :  { %1284 = vperm.xlu0 %2075, %v1223_v38   ;;  %104 = vst.msk [vmem:[#allocation4 + $0x70] sm:$0xff] %vm25_vm1, %v2310_v33  ;;  %105 = vst.msk [vmem:[#allocation4 + $0x78] sm:$0xff] %vm25_vm1, %v2310_v33 }
  0x35   :  { %106 = vst.msk [vmem:[#allocation4 + $0x80] sm:$0xff] %vm25_vm1, %v2310_v33  ;;  %107 = vst.msk [vmem:[#allocation4 + $0x88] sm:$0xff] %vm25_vm1, %v2310_v33 }
  0x36   :  { %108 = vst.msk [vmem:[#allocation4 + $0x90] sm:$0xff] %vm25_vm1, %v2310_v33  ;;  %109 = vst.msk [vmem:[#allocation4 + $0x98] sm:$0xff] %vm25_vm1, %v2310_v33 }
  0x37   :  { %110 = vst.msk [vmem:[#allocation4 + $0xa0] sm:$0xff] %vm25_vm1, %v2310_v33  ;;  %111 = vst.msk [vmem:[#allocation4 + $0xa8] sm:$0xff] %vm25_vm1, %v2310_v33 }
  0x38   :  { %1287 = vperm.xlu0 %2075, %v1224_v40   ;;  %112 = vst.msk [vmem:[#allocation4 + $0xb0] sm:$0xff] %vm25_vm1, %v2310_v33  ;;  %113 = vst.msk [vmem:[#allocation4 + $0xb8] sm:$0xff] %vm25_vm1, %v2310_v33 }
  0x39   :  { %114 = vst.msk [vmem:[#allocation4 + $0xc0] sm:$0xff] %vm25_vm1, %v2310_v33  ;;  %115 = vst.msk [vmem:[#allocation4 + $0xc8] sm:$0xff] %vm25_vm1, %v2310_v33 }
  0x3a   :  { %116 = vst.msk [vmem:[#allocation4 + $0xd0] sm:$0xff] %vm25_vm1, %v2310_v33  ;;  %117 = vst.msk [vmem:[#allocation4 + $0xd8] sm:$0xff] %vm25_vm1, %v2310_v33 }
  0x3b   :  { %118 = vst.msk [vmem:[#allocation4 + $0xe0] sm:$0xff] %vm25_vm1, %v2310_v33  ;;  %119 = vst.msk [vmem:[#allocation4 + $0xe8] sm:$0xff] %vm25_vm1, %v2310_v33 }
  0x3c   :  { %1290 = vperm.xlu0 %2075, %v1225_v42   ;;  %120 = vst.msk [vmem:[#allocation4 + $0xf0] sm:$0xff] %vm25_vm1, %v2310_v33  ;;  %121 = vst.msk [vmem:[#allocation4 + $0xf8] sm:$0xff] %vm25_vm1, %v2310_v33 }
  0x40   :  { %1293 = vperm.xlu0 %2075, %v1226_v44  }
  0x44   :  { %1299 = vperm.xlu0 %2075, %v1228_v45  }
  0x48   :  { %1305 = vperm.xlu0 %2075, %v1230_v46  }
  0x4c   :  { %1311 = vperm.xlu0 %2075, %v1232_v47  }
  0x50   :  { %1317 = vperm.xlu0 %2075, %v1234_v48  }
  0x54   :  { %1323 = vperm.xlu0 %2075, %v1236_v49  }
  0x58   :  { %1332 = vperm.xlu0 %2075, %v1239_v50  }
  0x85   :  { %v1243_v53 = vpop.permute.xlu0 %1242 }
  0x86   :  { %vm1337_vm3 = vcmp.eq.s32.totalorder %v2564_v6, %v1243_v53 }
  0x87   :  { %v2587_v17 = vpop.permute.xlu1 %1245 }
  0x88   :  { %vm1338_vm5 = vcmp.eq.s32.totalorder %v2564_v6, %v2587_v17 }
  0x8b   :  { %v1249_v3 = vpop.permute.xlu0 %1248  ;;  %v2620_v32 = vpop.permute.xlu1 %1251 }
  0x8c   :  { %vm1339_vm2 = vcmp.eq.s32.totalorder %v2564_v6, %v1249_v3  ;;  %vm1340_vm4 = vcmp.eq.s32.totalorder %v2564_v6, %v2620_v32 }
  0x8f   :  { %v1255_v50 = vpop.permute.xlu0 %1254 }
  0x90   :  { %vm1341_vm6 = vcmp.eq.s32.totalorder %v2564_v6, %v1255_v50 }
  0xdd   :  { %v2034_v54 = vpop.f32.mrb[0].mxu0  ;;  %v2050_v55 = vpop.f32.mrb[0].mxu1 }
  0xde   :  { %v2545_v56 = vadd.f32 %v2034_v54, %v2542_v52  ;;  %v2548_v57 = vadd.f32 %v2050_v55, %v2542_v52  ;;  %v340_v58 = vpop.f32.mrb[1].mxu0  ;;  %v404_v59 = vpop.f32.mrb[1].mxu1 }
  0xdf   :  { %v2035_v60 = vpop.f32.mrb[2].mxu0  ;;  %v2051_v61 = vpop.f32.mrb[2].mxu1  ;;  %v2551_v62 = vadd.f32 %v2542_v52, %v340_v58  ;;  %v2567_v7 = vadd.f32 %v2542_v52, %v404_v59 }
  0xe0   :  { %v2554_v63 = vadd.f32 %v2035_v60, %v2542_v52  ;;  %535 = vmax.xlane.f32.xlu0 %v2548_v57  ;;  %v407_v0 = vpop.f32.mrb[3].mxu1  ;;  %503 = vmax.xlane.f32.xlu1 %v2545_v56  ;;  %v343_v1 = vpop.f32.mrb[3].mxu0  ;;  %v2570_v8 = vadd.f32 %v2051_v61, %v2542_v52  ;;  %v1371_v16 = vsel %vm1339_vm2, %v2545_v56, 0.0 }
  0xe1   :  { %v2584_v15 = vadd.f32 %v2542_v52, %v407_v0  ;;  %v1369_v27 = vsel %vm1337_vm3, %v2551_v62, 0.0  ;;  %v2615_v30 = vadd.f32 %v2542_v52, %v343_v1  ;;  %v1261_v58 = vpop.permute.xlu0 %1260 }
  0xe2   :  { %v1372_v45 = vsel %vm1340_vm4, %v2554_v63, 0.0  ;;  %vm1343_vm8 = vcmp.eq.s32.totalorder %v2564_v6, %v1261_v58 }
  0xe3   :  { %v1370_v49 = vsel %vm1338_vm5, %v2615_v30, 0.0 }
  0xe4   :  { %505 = vmax.xlane.f32.xlu1 %v2554_v63  ;;  %499 = vmax.xlane.f32.xlu0 %v2551_v62 }
  0xe5   :  { %v2560_v4 = vpop.f32.mrb[4].mxu0  ;;  %v2562_v5 = vpop.f32.mrb[4].mxu1 }
  0xe6   :  { %v2572_v9 = vpop.f32.mrb[5].mxu0  ;;  %v2574_v10 = vpop.f32.mrb[5].mxu1  ;;  %v2782_v51 = vadd.f32 %v2560_v4, %v2542_v52  ;;  %v2792_v54 = vadd.f32 %v2562_v5, %v2542_v52 }
  0xe7   :  { %v2039_v11 = vpop.f32.mrb[6].mxu0  ;;  %v2055_v12 = vpop.f32.mrb[6].mxu1  ;;  %v2802_v59 = vadd.f32 %v2542_v52, %v2572_v9  ;;  %v2812_v0 = vadd.f32 %v2542_v52, %v2574_v10 }
  0xe8   :  { %v2576_v13 = vpop.f32.mrb[7].mxu1  ;;  %537 = vmax.xlane.f32.xlu1 %v2570_v8  ;;  %531 = vmax.xlane.f32.xlu0 %v2567_v7  ;;  %v2580_v14 = vpop.f32.mrb[7].mxu0  ;;  %v2596_v20 = vadd.f32 %v2039_v11, %v2542_v52  ;;  %v2618_v31 = vadd.f32 %v2055_v12, %v2542_v52 }
  0xe9   :  { %v2756_v36 = vadd.f32 %v2542_v52, %v2580_v14  ;;  %v2776_v48 = vadd.f32 %v2542_v52, %v2576_v13  ;;  %v1264_v61 = vpop.permute.xlu0 %1263  ;;  %v1258_v4 = vpop.permute.xlu1 %1257  ;;  %v1373_v5 = vsel %vm1341_vm6, %v2802_v59, 0.0 }
  0xea   :  { %vm1342_vm7 = vcmp.eq.s32.totalorder %v2564_v6, %v1258_v4  ;;  %vm1344_vm9 = vcmp.eq.s32.totalorder %v2564_v6, %v1264_v61  ;;  %v2910_v4 = vld [vmem:[#allocation2 + $0x10] sm:$0xff] }
  0xeb   :  { %v1374_v10 = vsel %vm1342_vm7, %v2756_v36, 0.0  ;;  %3869 = vst [vmem:[#allocation15_spill] sm:$0xff] %v2910_v4 }
  0xec   :  { %533 = vmax.xlane.f32.xlu1 %v2584_v15  ;;  %1405 = vadd.xlane.f32.xlu0 %v1371_v16 }
  0xed   :  { %v2591_v18 = vpop.f32.mrb[8].mxu0  ;;  %v2593_v19 = vpop.f32.mrb[8].mxu1 }
  0xee   :  { %v372_v21 = vpop.f32.mrb[9].mxu0  ;;  %v436_v22 = vpop.f32.mrb[9].mxu1  ;;  %v2834_v12 = vadd.f32 %v2591_v18, %v2542_v52  ;;  %v2843_v14 = vadd.f32 %v2593_v19, %v2542_v52 }
  0xef   :  { %v2599_v23 = vadd.f32 %v2542_v52, %v372_v21  ;;  %v2602_v24 = vadd.f32 %v2542_v52, %v436_v22  ;;  %v2604_v25 = vpop.f32.mrb[10].mxu0  ;;  %v2606_v26 = vpop.f32.mrb[10].mxu1  ;;  %v1375_v22 = vsel %vm1343_vm8, %v2782_v51, 0.0 }
  0xf0   :  { %v2609_v28 = vpop.f32.mrb[11].mxu1  ;;  %513 = vmax.xlane.f32.xlu1 %v2596_v20  ;;  %v2612_v29 = vpop.f32.mrb[11].mxu0  ;;  %1401 = vadd.xlane.f32.xlu0 %v1369_v27  ;;  %v2786_v53 = vadd.f32 %v2604_v25, %v2542_v52  ;;  %v2796_v55 = vadd.f32 %v2606_v26, %v2542_v52  ;;  %v1376_v25 = vsel %vm1344_vm9, %v2596_v20, 0.0 }
  0xf1   :  { %v2806_v60 = vadd.f32 %v2542_v52, %v2612_v29  ;;  %v2816_v1 = vadd.f32 %v2542_v52, %v2609_v28  ;;  %v1267_v3 = vpop.permute.xlu0 %1266  ;;  %v2876_v29 = vpop.permute.xlu1 %1296 }
  0xf2   :  { %vm1345_vm10 = vcmp.eq.s32.totalorder %v2564_v6, %v1267_v3  ;;  %v2908_v3 = vld [vmem:[#allocation2 + $0x90] sm:$0xff]  ;;  %vm1355_vm5 = vcmp.eq.s32.totalorder %v2564_v6, %v2876_v29 }
  0xf3   :  { %v1377_v27 = vsel %vm1345_vm10, %v2599_v23, 0.0  ;;  %3868 = vst [vmem:[#allocation14_spill] sm:$0xff] %v2908_v3 }
  0xf4   :  { %545 = vmax.xlane.f32.xlu1 %v2618_v31  ;;  %501 = vmax.xlane.f32.xlu0 %v2615_v30 }
  0xf5   :  { %v2046_v34 = vpop.f32.mrb[12].mxu0  ;;  %v2062_v35 = vpop.f32.mrb[12].mxu1 }
  0xf6   :  { %v2759_v37 = vadd.f32 %v2046_v34, %v2542_v52  ;;  %v2762_v38 = vadd.f32 %v2062_v35, %v2542_v52  ;;  %v388_v39 = vpop.f32.mrb[13].mxu0  ;;  %v452_v40 = vpop.f32.mrb[13].mxu1 }
  0xf7   :  { %v2765_v41 = vadd.f32 %v2542_v52, %v388_v39  ;;  %v2768_v42 = vadd.f32 %v2542_v52, %v452_v40  ;;  %v2047_v43 = vpop.f32.mrb[14].mxu0  ;;  %v2063_v44 = vpop.f32.mrb[14].mxu1 }
  0xf8   :  { %v391_v46 = vpop.f32.mrb[15].mxu0  ;;  %v455_v47 = vpop.f32.mrb[15].mxu1  ;;  %509 = vmax.xlane.f32.xlu1 %v2756_v36  ;;  %1407 = vadd.xlane.f32.xlu0 %v1372_v45  ;;  %v2821_v2 = vadd.f32 %v2047_v43, %v2542_v52  ;;  %v2828_v9 = vadd.f32 %v2063_v44, %v2542_v52 }
  0xf9   :  { %v1270_v11 = vpop.permute.xlu0 %1269  ;;  %v2837_v13 = vadd.f32 %v2542_v52, %v391_v46  ;;  %v2846_v16 = vadd.f32 %v2542_v52, %v455_v47  ;;  %v2882_v34 = vpop.permute.xlu1 %1302 }
  0xfa   :  { %3859 = vst [vmem:[#allocation5_spill] sm:$0xff] %v2828_v9  ;;  %vm1346_vm11 = vcmp.eq.s32.totalorder %v2564_v6, %v1270_v11  ;;  %vm1357_vm7 = vcmp.eq.s32.totalorder %v2564_v6, %v2882_v34 }
  0xfb   :  { %v1378_v32 = vsel %vm1346_vm11, %v2806_v60, 0.0  ;;  %v1389_v34 = vsel %vm1357_vm7, %v2812_v0, 0.0 }
  0xfc   :  { %541 = vmax.xlane.f32.xlu1 %v2776_v48  ;;  %1403 = vadd.xlane.f32.xlu0 %v1370_v49 }
  0xfd   :  { %v2848_v17 = vpop.permute.xlu0 %1272  ;;  %v2886_v39 = vpop.permute.xlu1 %1308 }
  0xfe   :  { %vm1347_vm12 = vcmp.eq.s32.totalorder %v2564_v6, %v2848_v17  ;;  %vm1359_vm9 = vcmp.eq.s32.totalorder %v2564_v6, %v2886_v39 }
  0xff   :  { %v1391_v39 = vsel %vm1359_vm9, %v2792_v54, 0.0 }
 0x100   :  { %521 = vmax.xlane.f32.xlu1 %v2786_v53  ;;  %511 = vmax.xlane.f32.xlu0 %v2782_v51 }
 0x101   :  { %v2853_v18 = vpop.permute.xlu0 %1275  ;;  %v2890_v43 = vpop.permute.xlu1 %1314 }
 0x102   :  { %3860 = vst [vmem:[#allocation6_spill] sm:$0xff] %v2890_v43  ;;  %v3111_v43 = vld [vmem:[#allocation2 + $0xf8] sm:$0xff]  ;;  %vm1348_vm13 = vcmp.eq.s32.totalorder %v2564_v6, %v2853_v18 }
 0x103   :  { %3907 = vst [vmem:[#allocation53_spill] sm:$0xff] %v3111_v43 }
 0x104   :  { %553 = vmax.xlane.f32.xlu1 %v2796_v55  ;;  %543 = vmax.xlane.f32.xlu0 %v2792_v54 }
 0x105   :  { %v2856_v21 = vpop.permute.xlu0 %1278  ;;  %v2894_v45 = vpop.permute.xlu1 %1320 }
 0x106   :  { %3861 = vst [vmem:[#allocation7_spill] sm:$0xff] %v2894_v45  ;;  %v3060_v45 = vld [vmem:[#allocation2 + $0x20] sm:$0xff]  ;;  %vm1349_vm14 = vcmp.eq.s32.totalorder %v2564_v6, %v2856_v21 }
 0x107   :  { %3898 = vst [vmem:[#allocation44_spill] sm:$0xff] %v3060_v45 }
 0x108   :  { %517 = vmax.xlane.f32.xlu1 %v2806_v60  ;;  %507 = vmax.xlane.f32.xlu0 %v2802_v59 }
 0x109   :  { %v2860_v52 = vpop.permute.xlu0 %1281  ;;  %v2898_v47 = vpop.permute.xlu1 %1326 }
 0x10a   :  { %3863 = vst [vmem:[#allocation9_spill] sm:$0xff] %v2898_v47  ;;  %vm1350_vm15 = vcmp.eq.s32.totalorder %v2564_v6, %v2860_v52 }
 0x10c   :  { %549 = vmax.xlane.f32.xlu1 %v2816_v1  ;;  %539 = vmax.xlane.f32.xlu0 %v2812_v0 }
 0x10d   :  { %v2864_v19 = vpop.permute.xlu0 %1284  ;;  %v2902_v50 = vpop.permute.xlu1 %1329 }
 0x10e   :  { %3865 = vst [vmem:[#allocation11_spill] sm:$0xff] %v2902_v50  ;;  %vm1351_vm0 = vcmp.eq.s32.totalorder %v2564_v6, %v2864_v19 }
 0x110   :  { %529 = vmax.xlane.f32.xlu1 %v2821_v2  ;;  %1409 = vadd.xlane.f32.xlu0 %v1373_v5 }
 0x111   :  { %v2869_v26 = vpop.permute.xlu0 %1287  ;;  %v2906_v61 = vpop.permute.xlu1 %1335 }
 0x112   :  { %3867 = vst [vmem:[#allocation13_spill] sm:$0xff] %v2906_v61  ;;  %vm1352_vm2 = vcmp.eq.s32.totalorder %v2564_v6, %v2869_v26 }
 0x114   :  { %561 = vmax.xlane.f32.xlu1 %v2828_v9  ;;  %1411 = vadd.xlane.f32.xlu0 %v1374_v10  ;;  %v1181_v9 = vld [vmem:[#allocation4 + $0x20] sm:$0xff] }
 0x115   :  { %v2874_v28 = vpop.permute.xlu0 %1290 }
 0x116   :  { %vm1353_vm3 = vcmp.eq.s32.totalorder %v2564_v6, %v2874_v28 }
 0x117   :  { %v1385_v26 = vsel %vm1353_vm3, %v2567_v7, 0.0 }
 0x118   :  { %525 = vmax.xlane.f32.xlu1 %v2837_v13  ;;  %519 = vmax.xlane.f32.xlu0 %v2834_v12 }
 0x119   :  { %v2880_v33 = vpop.permute.xlu0 %1293 }
 0x11a   :  { %vm1354_vm4 = vcmp.eq.s32.totalorder %v2564_v6, %v2880_v33 }
 0x11c   :  { %551 = vmax.xlane.f32.xlu0 %v2843_v14  ;;  %557 = vmax.xlane.f32.xlu1 %v2846_v16 }
 0x11d   :  { %v2884_v35 = vpop.permute.xlu0 %1299 }
 0x11e   :  { %vm1356_vm6 = vcmp.eq.s32.totalorder %v2564_v6, %v2884_v35  ;;  %v3326_v35 = vld [vmem:[%s3798_s4 + $0x8] sm:$0xff] }
 0x120   :  { %515 = vmax.xlane.f32.xlu0 %v2599_v23 }
 0x121   :  { %v2888_v40 = vpop.permute.xlu0 %1305 }
 0x122   :  { %vm1358_vm8 = vcmp.eq.s32.totalorder %v2564_v6, %v2888_v40 }
 0x124   :  { %547 = vmax.xlane.f32.xlu0 %v2602_v24 }
 0x125   :  { %v2892_v44 = vpop.permute.xlu0 %1311 }
 0x126   :  { %vm1360_vm10 = vcmp.eq.s32.totalorder %v2564_v6, %v2892_v44 }
 0x128   :  { %527 = vmax.xlane.f32.xlu0 %v2759_v37 }
 0x129   :  { %v2896_v46 = vpop.permute.xlu0 %1317 }
 0x12a   :  { %3862 = vst [vmem:[#allocation8_spill] sm:$0xff] %v2896_v46  ;;  %v2939_v46 = vld [vmem:[#allocation2 + $0x80] sm:$0xff] }
 0x12b   :  { %3877 = vst [vmem:[#allocation23_spill] sm:$0xff] %v2939_v46 }
 0x12c   :  { %559 = vmax.xlane.f32.xlu0 %v2762_v38 }
 0x12d   :  { %v2900_v49 = vpop.permute.xlu0 %1323 }
 0x12e   :  { %3864 = vst [vmem:[#allocation10_spill] sm:$0xff] %v2900_v49 }
 0x130   :  { %523 = vmax.xlane.f32.xlu0 %v2765_v41 }
 0x131   :  { %v2904_v58 = vpop.permute.xlu0 %1332 }
 0x132   :  { %3866 = vst [vmem:[#allocation12_spill] sm:$0xff] %v2904_v58  ;;  %v2972_v58 = vld [vmem:[#allocation2 + $0x38] sm:$0xff] }
 0x133   :  { %3882 = vst [vmem:[#allocation28_spill] sm:$0xff] %v2972_v58 }
 0x134   :  { %1413 = vadd.xlane.f32.xlu0 %v1375_v22 }
 0x138   :  { %1415 = vadd.xlane.f32.xlu0 %v1376_v25  ;;  %v2918_v25 = vld [vmem:[#allocation2 + $0x18] sm:$0xff] }
 0x139   :  { %3872 = vst [vmem:[#allocation18_spill] sm:$0xff] %v2918_v25 }
 0x13c   :  { %1417 = vadd.xlane.f32.xlu0 %v1377_v27  ;;  %v2920_v27 = vld [vmem:[#allocation2] sm:$0xff] }
 0x13d   :  { %3873 = vst [vmem:[#allocation19_spill] sm:$0xff] %v2920_v27 }
 0x140   :  { %1419 = vadd.xlane.f32.xlu0 %v1378_v32  ;;  %v2937_v32 = vld [vmem:[#allocation2 + $0x98] sm:$0xff] }
 0x141   :  { %3876 = vst [vmem:[#allocation22_spill] sm:$0xff] %v2937_v32 }
 0x144   :  { %555 = vmax.xlane.f32.xlu0 %v2768_v42 }
 0x16d   :  { %v536_v5 = vpop.xlane.xlu0 %535  ;;  %v504_v10 = vpop.xlane.xlu1 %503 }
 0x16e   :  { %v2913_v11 = vmax.f32 %v2908_v3, %v536_v5  ;;  %v2916_v22 = vmax.f32 %v2910_v4, %v504_v10  ;;  %v1179_v3 = vld [vmem:[#allocation4 + $0x10] sm:$0xff] }
 0x170   :  { %3870 = vst [vmem:[#allocation16_spill] sm:$0xff] %v2913_v11  ;;  %3871 = vst [vmem:[#allocation17_spill] sm:$0xff] %v2916_v22  ;;  %703 = vperm.xlu1 %2076, %v2916_v22  }
 0x171   :  { %1158 = vst.msk [vmem:[#allocation2 + $0x90] sm:$0xff] %vm25_vm1, %v2913_v11  ;;  %1142 = vst.msk [vmem:[#allocation2 + $0x10] sm:$0xff] %vm25_vm1, %v2916_v22  ;;  %v506_v5 = vpop.xlane.xlu1 %505  ;;  %v500_v10 = vpop.xlane.xlu0 %499 }
 0x172   :  { %v2932_v50 = vmax.f32 %v2918_v25, %v506_v5  ;;  %v2935_v49 = vmax.f32 %v2920_v27, %v500_v10  ;;  %v2957_v25 = vld [vmem:[#allocation2 + $0x88] sm:$0xff] }
 0x173   :  { %3880 = vst [vmem:[#allocation26_spill] sm:$0xff] %v2957_v25 }
 0x174   :  { %3874 = vst [vmem:[#allocation20_spill] sm:$0xff] %v2932_v50  ;;  %3875 = vst [vmem:[#allocation21_spill] sm:$0xff] %v2935_v49  ;;  %783 = vperm.xlu1 %2076, %v2913_v11   ;;  %693 = vperm.xlu0 %2075, %v2935_v49  }
 0x175   :  { %1143 = vst.msk [vmem:[#allocation2 + $0x18] sm:$0xff] %vm25_vm1, %v2932_v50  ;;  %1140 = vst.msk [vmem:[#allocation2] sm:$0xff] %vm25_vm1, %v2935_v49  ;;  %v538_v5 = vpop.xlane.xlu1 %537  ;;  %v532_v10 = vpop.xlane.xlu0 %531 }
 0x176   :  { %v2952_v47 = vmax.f32 %v2937_v32, %v538_v5  ;;  %v2955_v61 = vmax.f32 %v2939_v46, %v532_v10  ;;  %v1177_v32 = vld [vmem:[#allocation4] sm:$0xff]  ;;  %v3013_v46 = vld [vmem:[#allocation2 + $0xa8] sm:$0xff] }
 0x177   :  { %3888 = vst [vmem:[#allocation34_spill] sm:$0xff] %v3013_v46 }
 0x178   :  { %3878 = vst [vmem:[#allocation24_spill] sm:$0xff] %v2952_v47  ;;  %3879 = vst [vmem:[#allocation25_spill] sm:$0xff] %v2955_v61  ;;  %773 = vperm.xlu1 %2076, %v2955_v61   ;;  %788 = vperm.xlu0 %2075, %v2952_v47  }
 0x179   :  { %1159 = vst.msk [vmem:[#allocation2 + $0x98] sm:$0xff] %vm25_vm1, %v2952_v47  ;;  %1156 = vst.msk [vmem:[#allocation2 + $0x80] sm:$0xff] %vm25_vm1, %v2955_v61  ;;  %v534_v5 = vpop.xlane.xlu1 %533  ;;  %v1406_v10 = vpop.xlane.xlu0 %1405  ;;  %v2986_v61 = vld [vmem:[#allocation2 + $0x8] sm:$0xff] }
 0x17a   :  { %v2970_v27 = vmax.f32 %v2957_v25, %v534_v5  ;;  %v1467_v11 = vadd.f32 %v1406_v10, %v1179_v3  ;;  %v2984_v10 = vld [vmem:[#allocation2 + $0xb8] sm:$0xff]  ;;  %3884 = vst [vmem:[#allocation30_spill] sm:$0xff] %v2986_v61 }
 0x17b   :  { %3883 = vst [vmem:[#allocation29_spill] sm:$0xff] %v2984_v10 }
 0x17c   :  { %3881 = vst [vmem:[#allocation27_spill] sm:$0xff] %v2970_v27  ;;  %1157 = vst.msk [vmem:[#allocation2 + $0x88] sm:$0xff] %vm25_vm1, %v2970_v27  ;;  %708 = vperm.xlu1 %2076, %v2932_v50   ;;  %778 = vperm.xlu0 %2075, %v2970_v27   ;;  %v1178_v50 = vld [vmem:[#allocation4 + $0x8] sm:$0xff] }
 0x17d   :  { %1499 = vst.msk [vmem:[#allocation4 + $0x10] sm:$0xff] %vm25_vm1, %v1467_v11  ;;  %v514_v49 = vpop.xlane.xlu1 %513  ;;  %v1402_v47 = vpop.xlane.xlu0 %1401 }
 0x17e   :  { %v2982_v5 = vmax.f32 %v2972_v58, %v514_v49  ;;  %v1465_v3 = vadd.f32 %v1402_v47, %v1177_v32  ;;  %v2999_v47 = vld [vmem:[#allocation2 + $0x28] sm:$0xff]  ;;  %v1180_v32 = vld [vmem:[#allocation4 + $0x18] sm:$0xff] }
 0x17f   :  { %3887 = vst [vmem:[#allocation33_spill] sm:$0xff] %v2999_v47 }
 0x180   :  { %1147 = vst.msk [vmem:[#allocation2 + $0x38] sm:$0xff] %vm25_vm1, %v2982_v5  ;;  %1497 = vst.msk [vmem:[#allocation4] sm:$0xff] %vm25_vm1, %v1465_v3 }
 0x181   :  { %v546_v11 = vpop.xlane.xlu1 %545  ;;  %v502_v27 = vpop.xlane.xlu0 %501 }
 0x182   :  { %v2994_v25 = vmax.f32 %v2984_v10, %v546_v11  ;;  %v2997_v49 = vmax.f32 %v2986_v61, %v502_v27 }
 0x184   :  { %3885 = vst [vmem:[#allocation31_spill] sm:$0xff] %v2994_v25  ;;  %3886 = vst [vmem:[#allocation32_spill] sm:$0xff] %v2997_v49  ;;  %698 = vperm.xlu1 %2076, %v2997_v49  }
 0x185   :  { %1163 = vst.msk [vmem:[#allocation2 + $0xb8] sm:$0xff] %vm25_vm1, %v2994_v25  ;;  %1141 = vst.msk [vmem:[#allocation2 + $0x8] sm:$0xff] %vm25_vm1, %v2997_v49  ;;  %v510_v11 = vpop.xlane.xlu1 %509  ;;  %v1408_v27 = vpop.xlane.xlu0 %1407 }
 0x186   :  { %v3011_v22 = vmax.f32 %v2999_v47, %v510_v11  ;;  %v1468_v58 = vadd.f32 %v1408_v27, %v1180_v32  ;;  %v3023_v11 = vld [vmem:[#allocation2 + $0x58] sm:$0xff]  ;;  %v3025_v32 = vld [vmem:[#allocation2 + $0x30] sm:$0xff] }
 0x187   :  { %3890 = vst [vmem:[#allocation36_spill] sm:$0xff] %v3023_v11  ;;  %3891 = vst [vmem:[#allocation37_spill] sm:$0xff] %v3025_v32 }
 0x188   :  { %1145 = vst.msk [vmem:[#allocation2 + $0x28] sm:$0xff] %vm25_vm1, %v3011_v22  ;;  %1500 = vst.msk [vmem:[#allocation4 + $0x18] sm:$0xff] %vm25_vm1, %v1468_v58 }
 0x189   :  { %v542_v3 = vpop.xlane.xlu1 %541  ;;  %v1404_v61 = vpop.xlane.xlu0 %1403 }
 0x18a   :  { %v3021_v49 = vmax.f32 %v3013_v46, %v542_v3  ;;  %v1466_v4 = vadd.f32 %v1404_v61, %v1178_v50  ;;  %v3038_v50 = vld [vmem:[#allocation2 + $0xd8] sm:$0xff]  ;;  %v3040_v61 = vld [vmem:[#allocation2 + $0xb0] sm:$0xff] }
 0x18b   :  { %3894 = vst [vmem:[#allocation40_spill] sm:$0xff] %v3038_v50  ;;  %3895 = vst [vmem:[#allocation41_spill] sm:$0xff] %v3040_v61 }
 0x18c   :  { %3889 = vst [vmem:[#allocation35_spill] sm:$0xff] %v3021_v49  ;;  %1161 = vst.msk [vmem:[#allocation2 + $0xa8] sm:$0xff] %vm25_vm1, %v3021_v49 }
 0x18d   :  { %1498 = vst.msk [vmem:[#allocation4 + $0x8] sm:$0xff] %vm25_vm1, %v1466_v4  ;;  %v522_v10 = vpop.xlane.xlu1 %521  ;;  %v512_v58 = vpop.xlane.xlu0 %511  ;;  %v3077_v4 = vld [vmem:[#allocation2 + $0xc8] sm:$0xff] }
 0x18e   :  { %v3033_v47 = vmax.f32 %v3023_v11, %v522_v10  ;;  %v3036_v3 = vmax.f32 %v3025_v32, %v512_v58  ;;  %v3058_v11 = vld [vmem:[#allocation2 + $0x48] sm:$0xff]  ;;  %3901 = vst [vmem:[#allocation47_spill] sm:$0xff] %v3077_v4 }
 0x18f   :  { %3897 = vst [vmem:[#allocation43_spill] sm:$0xff] %v3058_v11 }
 0x190   :  { %3892 = vst [vmem:[#allocation38_spill] sm:$0xff] %v3033_v47  ;;  %3893 = vst [vmem:[#allocation39_spill] sm:$0xff] %v3036_v3  ;;  %748 = vperm.xlu0 %2075, %v3033_v47   ;;  %723 = vperm.xlu1 %2076, %v3036_v3  }
 0x191   :  { %1151 = vst.msk [vmem:[#allocation2 + $0x58] sm:$0xff] %vm25_vm1, %v3033_v47  ;;  %1146 = vst.msk [vmem:[#allocation2 + $0x30] sm:$0xff] %vm25_vm1, %v3036_v3  ;;  %v554_v10 = vpop.xlane.xlu1 %553  ;;  %v544_v58 = vpop.xlane.xlu0 %543 }
 0x192   :  { %v3053_v46 = vmax.f32 %v3038_v50, %v554_v10  ;;  %v3056_v27 = vmax.f32 %v3040_v61, %v544_v58  ;;  %v3079_v50 = vld [vmem:[#allocation2 + $0xa0] sm:$0xff] }
 0x193   :  { %3902 = vst [vmem:[#allocation48_spill] sm:$0xff] %v3079_v50 }
 0x194   :  { %3896 = vst [vmem:[#allocation42_spill] sm:$0xff] %v3056_v27  ;;  %1167 = vst.msk [vmem:[#allocation2 + $0xd8] sm:$0xff] %vm25_vm1, %v3053_v46  ;;  %803 = vperm.xlu1 %2076, %v3056_v27  }
 0x195   :  { %1162 = vst.msk [vmem:[#allocation2 + $0xb0] sm:$0xff] %vm25_vm1, %v3056_v27  ;;  %v518_v10 = vpop.xlane.xlu1 %517  ;;  %v508_v58 = vpop.xlane.xlu0 %507  ;;  %v1182_v27 = vld [vmem:[#allocation4 + $0x28] sm:$0xff] }
 0x196   :  { %v3072_v3 = vmax.f32 %v3058_v11, %v518_v10  ;;  %v3075_v32 = vmax.f32 %v3060_v45, %v508_v58  ;;  %v3097_v11 = vld [vmem:[#allocation2 + $0x78] sm:$0xff] }
 0x197   :  { %3905 = vst [vmem:[#allocation51_spill] sm:$0xff] %v3097_v11 }
 0x198   :  { %3899 = vst [vmem:[#allocation45_spill] sm:$0xff] %v3072_v3  ;;  %3900 = vst [vmem:[#allocation46_spill] sm:$0xff] %v3075_v32  ;;  %738 = vperm.xlu0 %2075, %v3072_v3   ;;  %713 = vperm.xlu1 %2076, %v3075_v32  }
 0x199   :  { %1149 = vst.msk [vmem:[#allocation2 + $0x48] sm:$0xff] %vm25_vm1, %v3072_v3  ;;  %1144 = vst.msk [vmem:[#allocation2 + $0x20] sm:$0xff] %vm25_vm1, %v3075_v32  ;;  %v550_v10 = vpop.xlane.xlu1 %549  ;;  %v540_v58 = vpop.xlane.xlu0 %539 }
 0x19a   :  { %v3092_v61 = vmax.f32 %v3077_v4, %v550_v10  ;;  %v3095_v47 = vmax.f32 %v3079_v50, %v540_v58  ;;  %v3125_v50 = vld [vmem:[#allocation2 + $0x50] sm:$0xff] }
 0x19b   :  { %3910 = vst [vmem:[#allocation56_spill] sm:$0xff] %v3125_v50 }
 0x19c   :  { %3903 = vst [vmem:[#allocation49_spill] sm:$0xff] %v3092_v61  ;;  %3904 = vst [vmem:[#allocation50_spill] sm:$0xff] %v3095_v47  ;;  %793 = vperm.xlu1 %2076, %v3095_v47  }
 0x19d   :  { %1165 = vst.msk [vmem:[#allocation2 + $0xc8] sm:$0xff] %vm25_vm1, %v3092_v61  ;;  %1160 = vst.msk [vmem:[#allocation2 + $0xa0] sm:$0xff] %vm25_vm1, %v3095_v47  ;;  %v530_v10 = vpop.xlane.xlu1 %529  ;;  %v1410_v58 = vpop.xlane.xlu0 %1409 }
 0x19e   :  { %v3109_v32 = vmax.f32 %v3097_v11, %v530_v10  ;;  %v1469_v45 = vadd.f32 %v1410_v58, %v1181_v9  ;;  %v3123_v58 = vld [vmem:[#allocation2 + $0x68] sm:$0xff] }
 0x19f   :  { %3909 = vst [vmem:[#allocation55_spill] sm:$0xff] %v3123_v58  ;;  %v3141_v11 = vld [vmem:[#allocation2 + $0xe8] sm:$0xff] }
 0x1a0   :  { %3906 = vst [vmem:[#allocation52_spill] sm:$0xff] %v3109_v32  ;;  %1155 = vst.msk [vmem:[#allocation2 + $0x78] sm:$0xff] %vm25_vm1, %v3109_v32  ;;  %768 = vperm.xlu0 %2075, %v3109_v32   ;;  %728 = vperm.xlu1 %2076, %v2982_v5  }
 0x1a1   :  { %1501 = vst.msk [vmem:[#allocation4 + $0x20] sm:$0xff] %vm25_vm1, %v1469_v45  ;;  %v562_v3 = vpop.xlane.xlu1 %561  ;;  %v1412_v47 = vpop.xlane.xlu0 %1411  ;;  %3914 = vst [vmem:[#allocation60_spill] sm:$0xff] %v3141_v11 }
 0x1a2   :  { %v3121_v10 = vmax.f32 %v3111_v43, %v562_v3  ;;  %v1470_v9 = vadd.f32 %v1412_v47, %v1182_v27  ;;  %v3139_v27 = vld [vmem:[#allocation2 + $0xd0] sm:$0xff] }
 0x1a3   :  { %3913 = vst [vmem:[#allocation59_spill] sm:$0xff] %v3139_v27 }
 0x1a4   :  { %3908 = vst [vmem:[#allocation54_spill] sm:$0xff] %v3121_v10  ;;  %1171 = vst.msk [vmem:[#allocation2 + $0xf8] sm:$0xff] %vm25_vm1, %v3121_v10  ;;  %808 = vperm.xlu1 %2076, %v2994_v25   ;;  %v3159_v25 = vld [vmem:[#allocation2 + $0x40] sm:$0xff] }
 0x1a5   :  { %1502 = vst.msk [vmem:[#allocation4 + $0x28] sm:$0xff] %vm25_vm1, %v1470_v9  ;;  %v526_v45 = vpop.xlane.xlu1 %525  ;;  %v520_v32 = vpop.xlane.xlu0 %519  ;;  %3917 = vst [vmem:[#allocation63_spill] sm:$0xff] %v3159_v25 }
 0x1a6   :  { %v3134_v3 = vmax.f32 %v3123_v58, %v526_v45  ;;  %v3137_v47 = vmax.f32 %v3125_v50, %v520_v32  ;;  %v3173_v58 = vld [vmem:[#allocation2 + $0xc0] sm:$0xff]  ;;  %v1379_v50 = vsel %vm1347_vm12, %v2834_v12, 0.0 }
 0x1a7   :  { %3919 = vst [vmem:[#allocation65_spill] sm:$0xff] %v3173_v58 }
 0x1a8   :  { %3911 = vst [vmem:[#allocation57_spill] sm:$0xff] %v3134_v3  ;;  %3912 = vst [vmem:[#allocation58_spill] sm:$0xff] %v3137_v47  ;;  %758 = vperm.xlu0 %2075, %v3134_v3   ;;  %718 = vperm.xlu1 %2076, %v3011_v22  }
 0x1a9   :  { %1153 = vst.msk [vmem:[#allocation2 + $0x68] sm:$0xff] %vm25_vm1, %v3134_v3  ;;  %1150 = vst.msk [vmem:[#allocation2 + $0x50] sm:$0xff] %vm25_vm1, %v3137_v47  ;;  %v552_v32 = vpop.xlane.xlu0 %551  ;;  %v558_v45 = vpop.xlane.xlu1 %557 }
 0x1aa   :  { %v3154_v43 = vmax.f32 %v3139_v27, %v552_v32  ;;  %v3157_v4 = vmax.f32 %v3141_v11, %v558_v45  ;;  %v3183_v11 = vld [vmem:[#allocation2 + $0x70] sm:$0xff] }
 0x1ab   :  { %3921 = vst [vmem:[#allocation67_spill] sm:$0xff] %v3183_v11 }
 0x1ac   :  { %3915 = vst [vmem:[#allocation61_spill] sm:$0xff] %v3154_v43  ;;  %3916 = vst [vmem:[#allocation62_spill] sm:$0xff] %v3157_v4  ;;  %798 = vperm.xlu1 %2076, %v3021_v49   ;;  %v3193_v49 = vld [vmem:[#allocation2 + $0xf0] sm:$0xff] }
 0x1ad   :  { %1166 = vst.msk [vmem:[#allocation2 + $0xd0] sm:$0xff] %vm25_vm1, %v3154_v43  ;;  %1169 = vst.msk [vmem:[#allocation2 + $0xe8] sm:$0xff] %vm25_vm1, %v3157_v4  ;;  %v516_v32 = vpop.xlane.xlu0 %515 }
 0x1ae   :  { %v3171_v45 = vmax.f32 %v3159_v25, %v516_v32  ;;  %3922 = vst [vmem:[#allocation68_spill] sm:$0xff] %v3193_v49 }
 0x1b0   :  { %3918 = vst [vmem:[#allocation64_spill] sm:$0xff] %v3171_v45  ;;  %1148 = vst.msk [vmem:[#allocation2 + $0x40] sm:$0xff] %vm25_vm1, %v3171_v45  ;;  %743 = vperm.xlu1 %2076, %v3137_v47   ;;  %v3203_v47 = vld [vmem:[#allocation2 + $0x60] sm:$0xff] }
 0x1b1   :  { %v548_v27 = vpop.xlane.xlu0 %547 }
 0x1b2   :  { %v3181_v3 = vmax.f32 %v3173_v58, %v548_v27 }
 0x1b4   :  { %3920 = vst [vmem:[#allocation66_spill] sm:$0xff] %v3181_v3  ;;  %1164 = vst.msk [vmem:[#allocation2 + $0xc0] sm:$0xff] %vm25_vm1, %v3181_v3  ;;  %823 = vperm.xlu1 %2076, %v3154_v43  }
 0x1b5   :  { %v528_v9 = vpop.xlane.xlu0 %527 }
 0x1b6   :  { %v3191_v25 = vmax.f32 %v3183_v11, %v528_v9  ;;  %v1183_v11 = vld [vmem:[#allocation4 + $0x30] sm:$0xff] }
 0x1b8   :  { %1154 = vst.msk [vmem:[#allocation2 + $0x70] sm:$0xff] %vm25_vm1, %v3191_v25  ;;  %733 = vperm.xlu1 %2076, %v3171_v45   ;;  %v1185_v45 = vld [vmem:[#allocation4 + $0x40] sm:$0xff] }
 0x1b9   :  { %v560_v32 = vpop.xlane.xlu0 %559 }
 0x1ba   :  { %v3201_v58 = vmax.f32 %v3193_v49, %v560_v32  ;;  %v1184_v49 = vld [vmem:[#allocation4 + $0x38] sm:$0xff] }
 0x1bc   :  { %1170 = vst.msk [vmem:[#allocation2 + $0xf0] sm:$0xff] %vm25_vm1, %v3201_v58  ;;  %813 = vperm.xlu1 %2076, %v3181_v3  }
 0x1bd   :  { %v524_v27 = vpop.xlane.xlu0 %523 }
 0x1be   :  { %v3211_v43 = vmax.f32 %v3203_v47, %v524_v27 }
 0x1c0   :  { %1152 = vst.msk [vmem:[#allocation2 + $0x60] sm:$0xff] %vm25_vm1, %v3211_v43  ;;  %828 = vperm.xlu1 %2076, %v3053_v46  }
 0x1c1   :  { %v1414_v32 = vpop.xlane.xlu0 %1413 }
 0x1c2   :  { %v1471_v9 = vadd.f32 %v1414_v32, %v1183_v11  ;;  %v1380_v32 = vsel %vm1348_vm13, %v2786_v53, 0.0 }
 0x1c4   :  { %1503 = vst.msk [vmem:[#allocation4 + $0x30] sm:$0xff] %vm25_vm1, %v1471_v9  ;;  %818 = vperm.xlu1 %2076, %v3092_v61   ;;  %v1186_v61 = vld [vmem:[#allocation4 + $0x48] sm:$0xff] }
 0x1c5   :  { %v1416_v27 = vpop.xlane.xlu0 %1415 }
 0x1c6   :  { %v1472_v3 = vadd.f32 %v1416_v27, %v1184_v49 }
 0x1c7   :  { %1421 = vadd.xlane.f32.xlu0 %v1379_v50  ;;  %v1381_v50 = vsel %vm1349_vm14, %v2765_v41, 0.0 }
 0x1c8   :  { %1504 = vst.msk [vmem:[#allocation4 + $0x38] sm:$0xff] %vm25_vm1, %v1472_v3  ;;  %763 = vperm.xlu1 %2076, %v3191_v25   ;;  %v3233_v3 = vld [vmem:[#allocation2 + $0xe0] sm:$0xff] }
 0x1c9   :  { %v1418_v11 = vpop.xlane.xlu0 %1417  ;;  %3923 = vst [vmem:[#allocation69_spill] sm:$0xff] %v3233_v3 }
 0x1ca   :  { %v1473_v9 = vadd.f32 %v1418_v11, %v1185_v45 }
 0x1cb   :  { %1423 = vadd.xlane.f32.xlu0 %v1380_v32 }
 0x1cc   :  { %1505 = vst.msk [vmem:[#allocation4 + $0x40] sm:$0xff] %vm25_vm1, %v1473_v9  ;;  %843 = vperm.xlu1 %2076, %v3201_v58  }
 0x1cd   :  { %v1420_v17 = vpop.xlane.xlu0 %1419 }
 0x1ce   :  { %v1474_v49 = vadd.f32 %v1420_v17, %v1186_v61 }
 0x1cf   :  { %1425 = vadd.xlane.f32.xlu0 %v1381_v50 }
 0x1d0   :  { %1506 = vst.msk [vmem:[#allocation4 + $0x48] sm:$0xff] %vm25_vm1, %v1474_v49  ;;  %753 = vperm.xlu1 %2076, %v3211_v43  }
 0x1d1   :  { %v556_v18 = vpop.xlane.xlu0 %555 }
 0x1d2   :  { %v3238_v45 = vmax.f32 %v3233_v3, %v556_v18 }
 0x1d4   :  { %3924 = vst [vmem:[#allocation70_spill] sm:$0xff] %v3238_v45  ;;  %1168 = vst.msk [vmem:[#allocation2 + $0xe0] sm:$0xff] %vm25_vm1, %v3238_v45  ;;  %833 = vperm.xlu1 %2076, %v3238_v45  }
 0x1d8   :  { %848 = vperm.xlu1 %2076, %v3121_v10  }
 0x1dc   :  { %838 = vperm.xlu1 %2076, %v3157_v4  }
 0x1ef   :  { %v704_v21 = vpop.permute.xlu1 %703 }
 0x1f0   :  { %v853_v61 = vsub.f32 %v2545_v56, %v704_v21 }
 0x1f2   :  { %v887_v11 = vmul.f32 1.442695, %v853_v61 }
 0x1f3   :  { %v784_v9 = vpop.permute.xlu1 %783  ;;  %v694_v32 = vpop.permute.xlu0 %693 }
 0x1f4   :  { %2095 = vpow2.f32 %v887_v11  ;;  %v869_v17 = vsub.f32 %v2548_v57, %v784_v9  ;;  %v851_v49 = vsub.f32 %v2551_v62, %v694_v32 }
 0x1f6   :  { %v919_v50 = vmul.f32 1.442695, %v869_v17  ;;  %v883_v18 = vmul.f32 1.442695, %v851_v49 }
 0x1f7   :  { %v774_v27 = vpop.permute.xlu1 %773  ;;  %v789_v3 = vpop.permute.xlu0 %788 }
 0x1f8   :  { %2097 = vpow2.f32 %v919_v50  ;;  %v867_v10 = vsub.f32 %v2567_v7, %v774_v27  ;;  %v870_v4 = vsub.f32 %v2570_v8, %v789_v3 }
 0x1f9   :  { %2099 = vpow2.f32 %v883_v18 }
 0x1fa   :  { %v915_v45 = vmul.f32 1.442695, %v867_v10  ;;  %v921_v61 = vmul.f32 1.442695, %v870_v4 }
 0x1fb   :  { %v709_v56 = vpop.permute.xlu1 %708  ;;  %v779_v62 = vpop.permute.xlu0 %778 }
 0x1fc   :  { %2101 = vpow2.f32 %v915_v45  ;;  %v854_v21 = vsub.f32 %v2554_v63, %v709_v56  ;;  %v868_v27 = vsub.f32 %v2584_v15, %v779_v62 }
 0x1fe   :  { %v2096_v11 = vpop.eup %2095  ;;  %v889_v9 = vmul.f32 1.442695, %v854_v21  ;;  %v917_v45 = vmul.f32 1.442695, %v868_v27 }
 0x200   :  { %2103 = vpow2.f32 %v889_v9  ;;  %1015 = vadd.xlane.f32.xlu1 %v2096_v11 }
 0x201   :  { %2105 = vpow2.f32 %v921_v61 }
 0x202   :  { %v2098_v32 = vpop.eup %2097 }
 0x203   :  { %v2100_v17 = vpop.eup %2099  ;;  %v699_v49 = vpop.permute.xlu1 %698 }
 0x204   :  { %v852_v50 = vsub.f32 %v2615_v30, %v699_v49  ;;  %1011 = vadd.xlane.f32.xlu0 %v2100_v17  ;;  %1047 = vadd.xlane.f32.xlu1 %v2098_v32 }
 0x206   :  { %v2102_v10 = vpop.eup %2101  ;;  %v885_v3 = vmul.f32 1.442695, %v852_v50 }
 0x208   :  { %2107 = vpow2.f32 %v885_v3  ;;  %1043 = vadd.xlane.f32.xlu1 %v2102_v10 }
 0x209   :  { %2109 = vpow2.f32 %v917_v45 }
 0x20a   :  { %v2104_v63 = vpop.eup %2103 }
 0x20b   :  { %v2106_v4 = vpop.eup %2105  ;;  %1017 = vadd.xlane.f32.xlu0 %v2104_v63 }
 0x20c   :  { %1049 = vadd.xlane.f32.xlu1 %v2106_v4 }
 0x20f   :  { %v724_v18 = vpop.permute.xlu1 %723 }
 0x210   :  { %v857_v56 = vsub.f32 %v2782_v51, %v724_v18 }
 0x212   :  { %v2108_v21 = vpop.eup %2107  ;;  %v895_v61 = vmul.f32 1.442695, %v857_v56 }
 0x213   :  { %v804_v11 = vpop.permute.xlu1 %803  ;;  %1013 = vadd.xlane.f32.xlu1 %v2108_v21  ;;  %v2110_v30 = vpop.eup %2109 }
 0x214   :  { %2111 = vpow2.f32 %v895_v61  ;;  %v749_v61 = vpop.permute.xlu0 %748 }
 0x217   :  { %v714_v9 = vpop.permute.xlu1 %713  ;;  %1045 = vadd.xlane.f32.xlu1 %v2110_v30 }
 0x218   :  { %v855_v62 = vsub.f32 %v2802_v59, %v714_v9 }
 0x21a   :  { %v891_v32 = vmul.f32 1.442695, %v855_v62 }
 0x21b   :  { %v794_v17 = vpop.permute.xlu1 %793 }
 0x21c   :  { %2113 = vpow2.f32 %v891_v32  ;;  %v871_v49 = vsub.f32 %v2812_v0, %v794_v17 }
 0x21e   :  { %v2112_v27 = vpop.eup %2111  ;;  %v923_v50 = vmul.f32 1.442695, %v871_v49 }
 0x21f   :  { %v729_v10 = vpop.permute.xlu1 %728  ;;  %1023 = vadd.xlane.f32.xlu0 %v2112_v27 }
 0x220   :  { %2115 = vpow2.f32 %v923_v50  ;;  %v858_v51 = vsub.f32 %v2596_v20, %v729_v10  ;;  %v862_v20 = vsub.f32 %v2786_v53, %v749_v61  ;;  %v873_v10 = vsub.f32 %v2792_v54, %v804_v11 }
 0x221   :  { %v1392_v54 = vsel %vm1360_vm10, %v2618_v31, 0.0 }
 0x222   :  { %v897_v3 = vmul.f32 1.442695, %v858_v51  ;;  %v905_v27 = vmul.f32 1.442695, %v862_v20 }
 0x223   :  { %v3259_v45 = vpop.permute.xlu1 %808 }
 0x224   :  { %2117 = vpow2.f32 %v897_v3 }
 0x226   :  { %v2114_v63 = vpop.eup %2113 }
 0x227   :  { %v719_v4 = vpop.permute.xlu1 %718  ;;  %1019 = vadd.xlane.f32.xlu1 %v2114_v63 }
 0x228   :  { %v856_v59 = vsub.f32 %v2756_v36, %v719_v4  ;;  %v739_v36 = vpop.permute.xlu0 %738  ;;  %v927_v4 = vmul.f32 1.442695, %v873_v10 }
 0x229   :  { %v860_v63 = vsub.f32 %v2806_v60, %v739_v36  ;;  %v1382_v36 = vsel %vm1350_vm15, %v2837_v13, 0.0 }
 0x22a   :  { %v2116_v18 = vpop.eup %2115  ;;  %v893_v56 = vmul.f32 1.442695, %v856_v59 }
 0x22b   :  { %v799_v21 = vpop.permute.xlu1 %798  ;;  %1051 = vadd.xlane.f32.xlu1 %v2116_v18  ;;  %v901_v18 = vmul.f32 1.442695, %v860_v63 }
 0x22c   :  { %2119 = vpow2.f32 %v893_v56  ;;  %v872_v17 = vsub.f32 %v2776_v48, %v799_v21 }
 0x22e   :  { %v2118_v30 = vpop.eup %2117  ;;  %v925_v51 = vmul.f32 1.442695, %v872_v17 }
 0x22f   :  { %v744_v9 = vpop.permute.xlu1 %743  ;;  %1025 = vadd.xlane.f32.xlu1 %v2118_v30 }
 0x230   :  { %v861_v62 = vsub.f32 %v2834_v12, %v744_v9 }
 0x232   :  { %v903_v32 = vmul.f32 1.442695, %v861_v62 }
 0x233   :  { %v3265_v49 = vpop.permute.xlu1 %823 }
 0x234   :  { %2121 = vpow2.f32 %v903_v32 }
 0x235   :  { %2123 = vpow2.f32 %v905_v27  ;;  %v769_v27 = vpop.permute.xlu0 %768 }
 0x236   :  { %v2120_v50 = vpop.eup %2119  ;;  %2125 = vpow2.f32 %v925_v51  ;;  %v866_v10 = vsub.f32 %v2821_v2, %v769_v27 }
 0x237   :  { %v734_v3 = vpop.permute.xlu1 %733  ;;  %1021 = vadd.xlane.f32.xlu1 %v2120_v50 }
 0x238   :  { %v859_v53 = vsub.f32 %v2599_v23, %v734_v3 }
 0x239   :  { %v759_v51 = vpop.permute.xlu0 %758 }
 0x23a   :  { %v899_v12 = vmul.f32 1.442695, %v859_v53  ;;  %v1383_v53 = vsel %vm1351_vm0, %v2759_v37, 0.0  ;;  %v864_v52 = vsub.f32 %v2837_v13, %v759_v51 }
 0x23b   :  { %v3270_v59 = vpop.permute.xlu1 %813 }
 0x23c   :  { %2127 = vpow2.f32 %v899_v12  ;;  %v1187_v12 = vld [vmem:[#allocation4 + $0x50] sm:$0xff]  ;;  %v909_v13 = vmul.f32 1.442695, %v864_v52  ;;  %v875_v28 = vsub.f32 %v2602_v24, %v3270_v59  ;;  %v1387_v59 = vsel %vm1355_vm5, %v2548_v57, 0.0 }
 0x23d   :  { %2129 = vpow2.f32 %v927_v4  ;;  %v913_v4 = vmul.f32 1.442695, %v866_v10  ;;  %v1893_v10 = vsel %vm25_vm1, %v3326_v35, 0.0  ;;  %v1390_v52 = vsel %vm1358_vm8, %v2776_v48, 0.0 }
 0x23e   :  { %v2122_v56 = vpop.eup %2121  ;;  %2131 = vpow2.f32 %v901_v18  ;;  %v931_v7 = vmul.f32 1.442695, %v875_v28  ;;  %v3372_v28 = vld [vmem:[%s3798_s4 + $0x28] sm:$0xff] }
 0x23f   :  { %v3272_v21 = vpop.permute.xlu1 %828  ;;  %1031 = vadd.xlane.f32.xlu1 %v2122_v56  ;;  %v2124_v11 = vpop.eup %2123  ;;  %v1901_v44 = vsel %vm25_vm1, %v3372_v28, 0.0 }
 0x240   :  { %v2126_v60 = vpop.eup %2125 }
 0x243   :  { %v3274_v61 = vpop.permute.xlu1 %818  ;;  %1033 = vadd.xlane.f32.xlu1 %v2124_v11 }
 0x244   :  { %v876_v33 = vsub.f32 %v2816_v1, %v3274_v61  ;;  %v3317_v61 = vld [vmem:[%s3798_s4] sm:$0xff] }
 0x245   :  { %v1892_v57 = vsel %vm25_vm1, %v3317_v61, 0.0 }
 0x246   :  { %v2128_v30 = vpop.eup %2127  ;;  %v933_v29 = vmul.f32 1.442695, %v876_v33  ;;  %v3928_v33 = vld [vmem:[#allocation15_spill] sm:$0xff] }
 0x247   :  { %v764_v23 = vpop.permute.xlu1 %763  ;;  %1027 = vadd.xlane.f32.xlu0 %v2128_v30  ;;  %1053 = vadd.xlane.f32.xlu1 %v2126_v60  ;;  %v2130_v20 = vpop.eup %2129  ;;  %v1188_v60 = vld [vmem:[#allocation4 + $0x58] sm:$0xff] }
 0x248   :  { %v865_v9 = vsub.f32 %v2759_v37, %v764_v23  ;;  %v2132_v62 = vpop.eup %2131  ;;  %v874_v37 = vsub.f32 %v2618_v31, %v3259_v45  ;;  %v1189_v23 = vld [vmem:[#allocation4 + $0x60] sm:$0xff] }
 0x24a   :  { %v911_v32 = vmul.f32 1.442695, %v865_v9 }
 0x24b   :  { %v3277_v17 = vpop.permute.xlu1 %843  ;;  %1055 = vadd.xlane.f32.xlu1 %v2130_v20  ;;  %1029 = vadd.xlane.f32.xlu0 %v2132_v62  ;;  %v1386_v62 = vsel %vm1354_vm4, %v2584_v15, 0.0  ;;  %v877_v15 = vsub.f32 %v2843_v14, %v3265_v49  ;;  %vm1964_vm4 = vcmp.eq.s32.totalorder %v2564_v6, 0 }
 0x24c   :  { %2133 = vpow2.f32 %v911_v32 }
 0x24d   :  { %v935_v49 = vmul.f32 1.442695, %v877_v15 }
 0x24f   :  { %v754_v50 = vpop.permute.xlu1 %753  ;;  %1427 = vadd.xlane.f32.xlu0 %v1382_v36 }
 0x250   :  { %v863_v3 = vsub.f32 %v2765_v41, %v754_v50  ;;  %v1384_v41 = vsel %vm1352_vm2, %v2821_v2, 0.0  ;;  %v929_v2 = vmul.f32 1.442695, %v874_v37  ;;  %v1388_v50 = vsel %vm1356_vm6, %v2570_v8, 0.0  ;;  %v3359_v37 = vld [vmem:[%s3798_s4 + $0x20] sm:$0xff] }
 0x251   :  { %v878_v8 = vsub.f32 %v2796_v55, %v3272_v21 }
 0x252   :  { %v907_v63 = vmul.f32 1.442695, %v863_v3 }
 0x253   :  { %1429 = vadd.xlane.f32.xlu0 %v1383_v53  ;;  %v834_v27 = vpop.permute.xlu1 %833  ;;  %v1894_v53 = vadd.f32 %v1893_v10, %v1892_v57  ;;  %v3931_v57 = vld [vmem:[#allocation14_spill] sm:$0xff] }
 0x254   :  { %2135 = vpow2.f32 %v907_v63  ;;  %v1422_v18 = vpop.xlane.xlu0 %1421  ;;  %v3336_v63 = vld [vmem:[%s3798_s4 + $0x10] sm:$0xff]  ;;  %v879_v21 = vsub.f32 %v2768_v42, %v834_v27 }
 0x255   :  { %v1475_v56 = vadd.f32 %v1422_v18, %v1187_v12  ;;  %2137 = vpow2.f32 %v913_v4  ;;  %v937_v12 = vmul.f32 1.442695, %v878_v8  ;;  %v1895_v4 = vsel %vm25_vm1, %v3336_v63, 0.0  ;;  %v3349_v18 = vld [vmem:[%s3798_s4 + $0x18] sm:$0xff] }
 0x256   :  { %v2134_v11 = vpop.eup %2133  ;;  %2139 = vpow2.f32 %v909_v13  ;;  %v1897_v40 = vsel %vm25_vm1, %v3349_v18, 0.0 }
 0x257   :  { %1507 = vst.msk [vmem:[#allocation4 + $0x50] sm:$0xff] %vm25_vm1, %v1475_v56  ;;  %1039 = vadd.xlane.f32.xlu1 %v2134_v11  ;;  %1431 = vadd.xlane.f32.xlu0 %v1384_v41  ;;  %2141 = vpow2.f32 %v929_v2  ;;  %v849_v3 = vpop.permute.xlu1 %848  ;;  %v1896_v56 = vadd.f32 %v1895_v4, %v1894_v53  ;;  %v881_v11 = vsub.f32 %v2762_v38, %v3277_v17  ;;  %v939_v41 = vmul.f32 1.442695, %v879_v21  ;;  %v3400_v21 = vld [vmem:[%s3798_s4 + $0x38] sm:$0xff] }
 0x258   :  { %v1424_v19 = vpop.xlane.xlu0 %1423  ;;  %2143 = vpow2.f32 %v931_v7  ;;  %v3927_v7 = vld [vmem:[#allocation7_spill] sm:$0xff] }
 0x259   :  { %v1476_v30 = vadd.f32 %v1424_v19, %v1188_v60  ;;  %2145 = vpow2.f32 %v933_v29  ;;  %v1898_v13 = vadd.f32 %v1897_v40, %v1896_v56  ;;  %v943_v19 = vmul.f32 1.442695, %v881_v11  ;;  %v3386_v29 = vld [vmem:[%s3798_s4 + $0x30] sm:$0xff] }
 0x25a   :  { %2147 = vpow2.f32 %v935_v49  ;;  %vm1363_vm12 = vcmp.eq.s32.totalorder %v2564_v6, %v3927_v7  ;;  %v3932_v49 = vld [vmem:[#allocation16_spill] sm:$0xff]  ;;  %v3938_v40 = vld [vmem:[#allocation23_spill] sm:$0xff] }
 0x25b   :  { %1508 = vst.msk [vmem:[#allocation4 + $0x58] sm:$0xff] %vm25_vm1, %v1476_v30  ;;  %1433 = vadd.xlane.f32.xlu0 %v1385_v26  ;;  %2149 = vpow2.f32 %v937_v12  ;;  %v839_v48 = vpop.permute.xlu1 %838  ;;  %v1899_v30 = vsel %vm25_vm1, %v3359_v37, 0.0  ;;  %v3933_v8 = vsub.f32 %v3931_v57, %v3932_v49  ;;  %v1704_v57 = vld [vmem:[%s3798_s4 + $0x60] sm:$0xff] }
 0x25c   :  { %v1426_v9 = vpop.xlane.xlu0 %1425  ;;  %2151 = vpow2.f32 %v939_v41  ;;  %v880_v17 = vsub.f32 %v2846_v16, %v839_v48  ;;  %v1900_v2 = vadd.f32 %v1899_v30, %v1898_v13  ;;  %v3939_v48 = vld [vmem:[#allocation25_spill] sm:$0xff] }
 0x25d   :  { %v1477_v20 = vadd.f32 %v1426_v9, %v1189_v23  ;;  %v3925_v23 = vld [vmem:[#allocation6_spill] sm:$0xff]  ;;  %2153 = vpow2.f32 %v943_v19  ;;  %v3926_v9 = vld [vmem:[#allocation5_spill] sm:$0xff]  ;;  %v663_v10 = vmul.f32 1.442695, %v3933_v8  ;;  %v3941_v19 = vld [vmem:[#allocation12_spill] sm:$0xff] }
 0x25e   :  { %v2136_v45 = vpop.eup %2135  ;;  %vm1361_vm11 = vcmp.eq.s32.totalorder %v2564_v6, %v3925_v23  ;;  %v1902_v27 = vadd.f32 %v1901_v44, %v1900_v2  ;;  %vm1367_vm14 = vcmp.eq.s32.totalorder %v2564_v6, %v3941_v19  ;;  %v3945_v44 = vld [vmem:[#allocation22_spill] sm:$0xff] }
 0x25f   :  { %1509 = vst.msk [vmem:[#allocation4 + $0x60] sm:$0xff] %vm25_vm1, %v1477_v20  ;;  %1035 = vadd.xlane.f32.xlu1 %v2136_v45  ;;  %1435 = vadd.xlane.f32.xlu0 %v1386_v62  ;;  %v2138_v32 = vpop.eup %2137  ;;  %v882_v20 = vsub.f32 %v3926_v9, %v849_v3  ;;  %v941_v45 = vmul.f32 1.442695, %v880_v17  ;;  %v1393_v31 = vsel %vm1361_vm11, %v2602_v24, 0.0  ;;  %v1903_v24 = vsel %vm25_vm1, %v3386_v29, 0.0  ;;  %v3935_v3 = vld [vmem:[#allocation21_spill] sm:$0xff] }
 0x260   :  { %v2140_v36 = vpop.eup %2139  ;;  %v1904_v4 = vadd.f32 %v1903_v24, %v1902_v27  ;;  %v3422_v17 = vld [vmem:[%s3798_s4 + $0x48] sm:$0xff]  ;;  %v1703_v27 = vld [vmem:[%s3798_s4 + $0x58] sm:$0xff] }
 0x261   :  { %v2142_v51 = vpop.eup %2141  ;;  %2155 = vpow2.f32 %v941_v45  ;;  %v1909_v45 = vsel %vm25_vm1, %v3422_v17, 0.0 }
 0x262   :  { %v2144_v0 = vpop.eup %2143 }
 0x263   :  { %1437 = vadd.xlane.f32.xlu0 %v1387_v59  ;;  %1041 = vadd.xlane.f32.xlu1 %v2138_v32  ;;  %v2146_v60 = vpop.eup %2145  ;;  %v3929_v32 = vld [vmem:[#allocation17_spill] sm:$0xff] }
 0x264   :  { %v2148_v26 = vpop.eup %2147  ;;  %v3930_v59 = vsub.f32 %v3928_v33, %v3929_v32  ;;  %v3436_v33 = vld [vmem:[%s3798_s4 + $0x50] sm:$0xff] }
 0x265   :  { %v2150_v62 = vpop.eup %2149 }
 0x266   :  { %v631_v15 = vmul.f32 1.442695, %v3930_v59  ;;  %v1911_v59 = vsel %vm25_vm1, %v3436_v33, 0.0 }
 0x267   :  { %1439 = vadd.xlane.f32.xlu0 %v1388_v50  ;;  %1037 = vadd.xlane.f32.xlu1 %v2140_v36  ;;  %v945_v36 = vmul.f32 1.442695, %v882_v20  ;;  %v2152_v50 = vpop.eup %2151  ;;  %v1399_v20 = vsel %vm1367_vm14, %v2762_v38, 0.0 }
 0x268   :  { %2157 = vpow2.f32 %v631_v15  ;;  %v2154_v56 = vpop.eup %2153  ;;  %v949_v15 = vld [vmem:[#allocation3 + $0x10] sm:$0xff] }
 0x269   :  { %2159 = vpow2.f32 %v945_v36 }
 0x26a   :  { %2161 = vpow2.f32 %v663_v10 }
 0x26b   :  { %1441 = vadd.xlane.f32.xlu0 %v1389_v34  ;;  %1057 = vadd.xlane.f32.xlu1 %v2142_v51  ;;  %v1395_v51 = vsel %vm1363_vm12, %v2843_v14, 0.0  ;;  %v3934_v34 = vld [vmem:[#allocation19_spill] sm:$0xff]  ;;  %v3409_v14 = vld [vmem:[%s3798_s4 + $0x40] sm:$0xff]  ;;  %v2156_v30 = vpop.eup %2155 }
 0x26c   :  { %v3936_v53 = vsub.f32 %v3934_v34, %v3935_v3  ;;  %v1907_v41 = vsel %vm25_vm1, %v3409_v14, 0.0  ;;  %v3948_v3 = vld [vmem:[#allocation8_spill] sm:$0xff] }
 0x26d   :  { %vm1362_vm15 = vcmp.eq.s32.totalorder %v2564_v6, %v3948_v3  ;;  %v1709_v3 = vld [vmem:[%s3798_s4 + $0x88] sm:$0xff] }
 0x26e   :  { %v627_v12 = vmul.f32 1.442695, %v3936_v53 }
 0x26f   :  { %1443 = vadd.xlane.f32.xlu0 %v1390_v52  ;;  %1059 = vadd.xlane.f32.xlu1 %v2144_v0  ;;  %v1905_v0 = vsel %vm25_vm1, %v3400_v21, 0.0  ;;  %v3937_v52 = vld [vmem:[#allocation9_spill] sm:$0xff] }
 0x270   :  { %vm1365_vm13 = vcmp.eq.s32.totalorder %v2564_v6, %v3937_v52  ;;  %2163 = vpow2.f32 %v627_v12  ;;  %v1906_v13 = vadd.f32 %v1905_v0, %v1904_v4  ;;  %v947_v12 = vld [vmem:[#allocation3] sm:$0xff]  ;;  %v965_v4 = vld [vmem:[#allocation3 + $0x90] sm:$0xff]  ;;  %v1705_v0 = vld [vmem:[%s3798_s4 + $0x68] sm:$0xff] }
 0x271   :  { %v1397_v11 = vsel %vm1365_vm13, %v2768_v42, 0.0 }
 0x272   :  { %v1908_v42 = vadd.f32 %v1907_v41, %v1906_v13  ;;  %v2158_v38 = vpop.eup %2157  ;;  %v1706_v13 = vld [vmem:[%s3798_s4 + $0x70] sm:$0xff] }
 0x273   :  { %1445 = vadd.xlane.f32.xlu0 %v1391_v39  ;;  %1061 = vadd.xlane.f32.xlu1 %v2146_v60  ;;  %v3940_v60 = vsub.f32 %v3938_v40, %v3939_v48  ;;  %v2160_v24 = vpop.eup %2159  ;;  %v981_v10 = vmul.f32 %v2158_v38, %v949_v15 }
 0x274   :  { %v1910_v32 = vadd.f32 %v1909_v45, %v1908_v42  ;;  %v2162_v8 = vpop.eup %2161  ;;  %v3952_v42 = vld [vmem:[#allocation10_spill] sm:$0xff] }
 0x275   :  { %v659_v39 = vmul.f32 1.442695, %v3940_v60  ;;  %v1394_v60 = vsel %vm1362_vm15, %v2816_v1, 0.0  ;;  %vm1364_vm0 = vcmp.eq.s32.totalorder %v2564_v6, %v3952_v42  ;;  %v3954_v1 = vld [vmem:[#allocation27_spill] sm:$0xff]  ;;  %v3958_v42 = vld [vmem:[#allocation37_spill] sm:$0xff] }
 0x276   :  { %v1912_v36 = vadd.f32 %v1911_v59, %v1910_v32  ;;  %v1707_v32 = vld [vmem:[%s3798_s4 + $0x78] sm:$0xff] }
 0x277   :  { %1447 = vadd.xlane.f32.xlu0 %v1392_v54  ;;  %1063 = vadd.xlane.f32.xlu1 %v2148_v26  ;;  %v3942_v26 = vld [vmem:[#allocation18_spill] sm:$0xff]  ;;  %v3943_v54 = vld [vmem:[#allocation20_spill] sm:$0xff]  ;;  %2165 = vpow2.f32 %v659_v39  ;;  %v1917_v39 = vsel %vm25_vm1, %v1705_v0, 0.0  ;;  %v1925_v0 = vsel %vm25_vm1, %v1709_v3, 0.0 }
 0x278   :  { %v3944_v23 = vsub.f32 %v3942_v26, %v3943_v54  ;;  %v997_v26 = vmul.f32 %v2162_v8, %v965_v4  ;;  %v1919_v54 = vsel %vm25_vm1, %v1706_v13, 0.0  ;;  %v1711_v13 = vld [vmem:[%s3798_s4 + $0x98] sm:$0xff] }
 0x27a   :  { %v633_v2 = vmul.f32 1.442695, %v3944_v23  ;;  %v2164_v34 = vpop.eup %2163 }
 0x27b   :  { %1449 = vadd.xlane.f32.xlu0 %v1393_v31  ;;  %1065 = vadd.xlane.f32.xlu1 %v2150_v62  ;;  %v3946_v62 = vld [vmem:[#allocation24_spill] sm:$0xff] }
 0x27c   :  { %v3947_v31 = vsub.f32 %v3945_v44, %v3946_v62  ;;  %2167 = vpow2.f32 %v633_v2  ;;  %v3953_v2 = vld [vmem:[#allocation26_spill] sm:$0xff] }
 0x27e   :  { %v665_v7 = vmul.f32 1.442695, %v3947_v31  ;;  %v1396_v31 = vsel %vm1364_vm0, %v2796_v55, 0.0 }
 0x27f   :  { %1453 = vadd.xlane.f32.xlu0 %v1395_v51  ;;  %1067 = vadd.xlane.f32.xlu1 %v2152_v50  ;;  %v1913_v50 = vsel %vm25_vm1, %v1703_v27, 0.0  ;;  %v1915_v51 = vsel %vm25_vm1, %v1704_v57, 0.0  ;;  %v1921_v27 = vsel %vm25_vm1, %v1707_v32, 0.0  ;;  %v950_v57 = vld [vmem:[#allocation3 + $0x18] sm:$0xff] }
 0x280   :  { %2169 = vpow2.f32 %v665_v7  ;;  %v1914_v49 = vadd.f32 %v1913_v50, %v1912_v36  ;;  %v963_v7 = vld [vmem:[#allocation3 + $0x80] sm:$0xff] }
 0x281   :  { %v2166_v23 = vpop.eup %2165  ;;  %v1708_v36 = vld [vmem:[%s3798_s4 + $0x80] sm:$0xff] }
 0x282   :  { %v1916_v52 = vadd.f32 %v1915_v51, %v1914_v49  ;;  %v995_v55 = vmul.f32 %v2166_v23, %v963_v7  ;;  %v1923_v49 = vsel %vm25_vm1, %v1708_v36, 0.0 }
 0x283   :  { %1457 = vadd.xlane.f32.xlu0 %v1397_v11  ;;  %1071 = vadd.xlane.f32.xlu1 %v2154_v56  ;;  %v3949_v56 = vld [vmem:[#allocation30_spill] sm:$0xff]  ;;  %v3950_v11 = vld [vmem:[#allocation32_spill] sm:$0xff] }
 0x284   :  { %v3951_v41 = vsub.f32 %v3949_v56, %v3950_v11  ;;  %v1918_v19 = vadd.f32 %v1917_v39, %v1916_v52  ;;  %v1710_v56 = vld [vmem:[%s3798_s4 + $0x90] sm:$0xff] }
 0x286   :  { %v629_v40 = vmul.f32 1.442695, %v3951_v41  ;;  %v1920_v59 = vadd.f32 %v1919_v54, %v1918_v19  ;;  %v2168_v50 = vpop.eup %2167 }
 0x287   :  { %1461 = vadd.xlane.f32.xlu0 %v1399_v20  ;;  %1069 = vadd.xlane.f32.xlu1 %v2156_v30  ;;  %v979_v30 = vmul.f32 %v2164_v34, %v947_v12  ;;  %v3955_v20 = vsub.f32 %v3953_v2, %v3954_v1  ;;  %v966_v34 = vld [vmem:[#allocation3 + $0x98] sm:$0xff]  ;;  %v982_v52 = vmul.f32 %v2168_v50, %v950_v57  ;;  %v1929_v1 = vsel %vm25_vm1, %v1711_v13, 0.0  ;;  %v1718_v13 = vld [vmem:[%s3798_s4 + $0xd0] sm:$0xff] }
 0x288   :  { %2171 = vpow2.f32 %v629_v40  ;;  %v1715_v57 = vld [vmem:[%s3798_s4 + $0xb8] sm:$0xff] }
 0x289   :  { %v661_v45 = vmul.f32 1.442695, %v3955_v20  ;;  %v1712_v20 = vld [vmem:[%s3798_s4 + $0xa0] sm:$0xff]  ;;  %v1937_v3 = vsel %vm25_vm1, %v1715_v57, 0.0 }
 0x28a   :  { %v2170_v8 = vpop.eup %2169 }
 0x28b   :  { %1073 = vadd.xlane.f32.xlu1 %v2160_v24  ;;  %v1922_v24 = vadd.f32 %v1921_v27, %v1920_v59  ;;  %2173 = vpow2.f32 %v661_v45  ;;  %v998_v40 = vmul.f32 %v2170_v8, %v966_v34  ;;  %v3961_v8 = vld [vmem:[#allocation44_spill] sm:$0xff] }
 0x28d   :  { %v1016_v53 = vpop.xlane.xlu1 %1015 }
 0x28e   :  { %v1077_v48 = vadd.f32 %v1016_v53, %v981_v10  ;;  %v3956_v10 = vld [vmem:[#allocation11_spill] sm:$0xff]  ;;  %v1924_v53 = vadd.f32 %v1923_v49, %v1922_v24  ;;  %v964_v24 = vld [vmem:[#allocation3 + $0x88] sm:$0xff] }
 0x28f   :  { %1451 = vadd.xlane.f32.xlu1 %v1394_v60  ;;  %vm1366_vm2 = vcmp.eq.s32.totalorder %v2564_v6, %v3956_v10  ;;  %v3957_v60 = vld [vmem:[#allocation13_spill] sm:$0xff]  ;;  %v3962_v10 = vld [vmem:[#allocation46_spill] sm:$0xff] }
 0x290   :  { %1110 = vst.msk [vmem:[#allocation3 + $0x10] sm:$0xff] %vm25_vm1, %v1077_v48  ;;  %v1398_v4 = vsel %vm1366_vm2, %v2846_v16, 0.0  ;;  %v1926_v11 = vadd.f32 %v1925_v0, %v1924_v53  ;;  %v1927_v48 = vsel %vm25_vm1, %v1710_v56, 0.0  ;;  %vm1368_vm3 = vcmp.eq.s32.totalorder %v2564_v6, %v3957_v60 }
 0x291   :  { %v1012_v44 = vpop.xlane.xlu0 %1011  ;;  %v1048_v62 = vpop.xlane.xlu1 %1047  ;;  %v1400_v2 = vsel %vm1368_vm3, %v3926_v9, 0.0  ;;  %v1713_v9 = vld [vmem:[%s3798_s4 + $0xa8] sm:$0xff] }
 0x292   :  { %v1075_v38 = vadd.f32 %v1012_v44, %v979_v30  ;;  %v1093_v15 = vadd.f32 %v1048_v62, %v997_v26  ;;  %v1928_v19 = vadd.f32 %v1927_v48, %v1926_v11  ;;  %v3959_v30 = vld [vmem:[#allocation39_spill] sm:$0xff]  ;;  %v2172_v44 = vpop.eup %2171  ;;  %v948_v62 = vld [vmem:[#allocation3 + $0x8] sm:$0xff]  ;;  %v1933_v32 = vsel %vm25_vm1, %v1713_v9, 0.0 }
 0x293   :  { %1455 = vadd.xlane.f32.xlu1 %v1396_v31  ;;  %v3960_v26 = vsub.f32 %v3958_v42, %v3959_v30  ;;  %v1931_v31 = vsel %vm25_vm1, %v1712_v20, 0.0  ;;  %v980_v59 = vmul.f32 %v2172_v44, %v948_v62  ;;  %v1717_v11 = vld [vmem:[%s3798_s4 + $0xc8] sm:$0xff]  ;;  %v953_v30 = vld [vmem:[#allocation3 + $0x30] sm:$0xff]  ;;  %v1720_v62 = vld [vmem:[%s3798_s4 + $0xe0] sm:$0xff] }
 0x294   :  { %1108 = vst.msk [vmem:[#allocation3] sm:$0xff] %vm25_vm1, %v1075_v38  ;;  %1126 = vst.msk [vmem:[#allocation3 + $0x90] sm:$0xff] %vm25_vm1, %v1093_v15  ;;  %v1930_v45 = vadd.f32 %v1929_v1, %v1928_v19  ;;  %v1714_v38 = vld [vmem:[%s3798_s4 + $0xb0] sm:$0xff]  ;;  %v3965_v48 = vld [vmem:[#allocation50_spill] sm:$0xff] }
 0x295   :  { %v1044_v51 = vpop.xlane.xlu1 %1043  ;;  %v639_v54 = vmul.f32 1.442695, %v3960_v26  ;;  %v2174_v27 = vpop.eup %2173  ;;  %v1935_v50 = vsel %vm25_vm1, %v1714_v38, 0.0  ;;  %v1943_v26 = vsel %vm25_vm1, %v1718_v13, 0.0  ;;  %v1722_v38 = vld [vmem:[%s3798_s4 + $0xf0] sm:$0xff] }
 0x296   :  { %v1091_v12 = vadd.f32 %v1044_v51, %v995_v55  ;;  %v1932_v7 = vadd.f32 %v1931_v31, %v1930_v45  ;;  %v3963_v51 = vsub.f32 %v3961_v8, %v3962_v10  ;;  %v996_v53 = vmul.f32 %v2174_v27, %v964_v24  ;;  %v1721_v31 = vld [vmem:[%s3798_s4 + $0xe8] sm:$0xff] }
 0x297   :  { %1459 = vadd.xlane.f32.xlu1 %v1398_v4  ;;  %2175 = vpow2.f32 %v639_v54  ;;  %v1719_v54 = vld [vmem:[%s3798_s4 + $0xd8] sm:$0xff] }
 0x298   :  { %1124 = vst.msk [vmem:[#allocation3 + $0x80] sm:$0xff] %vm25_vm1, %v1091_v12  ;;  %v1018_v41 = vpop.xlane.xlu0 %1017  ;;  %v1934_v15 = vadd.f32 %v1933_v32, %v1932_v7  ;;  %v635_v34 = vmul.f32 1.442695, %v3963_v51  ;;  %v1716_v12 = vld [vmem:[%s3798_s4 + $0xc0] sm:$0xff]  ;;  %v1945_v45 = vsel %vm25_vm1, %v1719_v54, 0.0  ;;  %v1947_v32 = vsel %vm25_vm1, %v1720_v62, 0.0 }
 0x299   :  { %v1078_v39 = vadd.f32 %v1018_v41, %v982_v52  ;;  %v1050_v16 = vpop.xlane.xlu1 %1049  ;;  %v1939_v52 = vsel %vm25_vm1, %v1716_v12, 0.0  ;;  %v967_v12 = vld [vmem:[#allocation3 + $0xa0] sm:$0xff]  ;;  %v3980_v62 = vld [vmem:[#allocation63_spill] sm:$0xff] }
 0x29a   :  { %v1094_v23 = vadd.f32 %v1050_v16, %v998_v40  ;;  %v1936_v49 = vadd.f32 %v1935_v50, %v1934_v15  ;;  %2177 = vpow2.f32 %v635_v34  ;;  %v3964_v40 = vld [vmem:[#allocation48_spill] sm:$0xff]  ;;  %v1941_v16 = vsel %vm25_vm1, %v1717_v11, 0.0  ;;  %v951_v50 = vld [vmem:[#allocation3 + $0x20] sm:$0xff] }
 0x29b   :  { %1111 = vst.msk [vmem:[#allocation3 + $0x18] sm:$0xff] %vm25_vm1, %v1078_v39  ;;  %1463 = vadd.xlane.f32.xlu1 %v1400_v2  ;;  %v3966_v60 = vsub.f32 %v3964_v40, %v3965_v48  ;;  %v3967_v2 = vld [vmem:[#allocation28_spill] sm:$0xff] }
 0x29c   :  { %1127 = vst.msk [vmem:[#allocation3 + $0x98] sm:$0xff] %vm25_vm1, %v1094_v23  ;;  %v1938_v4 = vadd.f32 %v1937_v3, %v1936_v49  ;;  %v3968_v1 = vsub.f32 %v3967_v2, %v2982_v5  ;;  %v1949_v5 = vsel %vm25_vm1, %v1721_v31, 0.0  ;;  %v1723_v15 = vld [vmem:[%s3798_s4 + $0xf8] sm:$0xff]  ;;  %v3969_v49 = vld [vmem:[#allocation33_spill] sm:$0xff]  ;;  %v952_v2 = vld [vmem:[#allocation3 + $0x28] sm:$0xff] }
 0x29d   :  { %v667_v39 = vmul.f32 1.442695, %v3966_v60  ;;  %v1953_v57 = vsel %vm25_vm1, %v1723_v15, 0.0  ;;  %v3970_v8 = vsub.f32 %v3969_v49, %v3011_v22  ;;  %v3971_v48 = vld [vmem:[#allocation56_spill] sm:$0xff]  ;;  %v3972_v60 = vld [vmem:[#allocation58_spill] sm:$0xff] }
 0x29e   :  { %v1940_v41 = vadd.f32 %v1939_v52, %v1938_v4  ;;  %v641_v20 = vmul.f32 1.442695, %v3968_v1  ;;  %v3973_v22 = vsub.f32 %v3971_v48, %v3972_v60  ;;  %v3977_v1 = vld [vmem:[#allocation34_spill] sm:$0xff]  ;;  %v3981_v31 = vld [vmem:[#allocation64_spill] sm:$0xff]  ;;  %v3989_v60 = vld [vmem:[#allocation67_spill] sm:$0xff] }
 0x29f   :  { %2179 = vpow2.f32 %v667_v39  ;;  %v637_v10 = vmul.f32 1.442695, %v3970_v8  ;;  %v957_v8 = vld [vmem:[#allocation3 + $0x50] sm:$0xff] }
 0x2a0   :  { %v1014_v36 = vpop.xlane.xlu1 %1013  ;;  %v1942_v19 = vadd.f32 %v1941_v16, %v1940_v41  ;;  %2181 = vpow2.f32 %v641_v20  ;;  %v954_v41 = vld [vmem:[#allocation3 + $0x38] sm:$0xff]  ;;  %v647_v39 = vmul.f32 1.442695, %v3973_v22  ;;  %v3978_v20 = vld [vmem:[#allocation35_spill] sm:$0xff]  ;;  %v3990_v22 = vsub.f32 %v3989_v60, %v3191_v25 }
 0x2a1   :  { %v1076_v55 = vadd.f32 %v1014_v36, %v980_v59  ;;  %v2176_v42 = vpop.eup %2175  ;;  %v1951_v36 = vsel %vm25_vm1, %v1722_v38, 0.0  ;;  %2183 = vpow2.f32 %v637_v10  ;;  %v3984_v38 = vld [vmem:[#allocation42_spill] sm:$0xff] }
 0x2a2   :  { %v1944_v23 = vadd.f32 %v1943_v26, %v1942_v19  ;;  %v985_v44 = vmul.f32 %v2176_v42, %v953_v30  ;;  %v3974_v42 = vld [vmem:[#allocation36_spill] sm:$0xff]  ;;  %v3975_v30 = vld [vmem:[#allocation38_spill] sm:$0xff]  ;;  %2185 = vpow2.f32 %v647_v39  ;;  %v655_v39 = vmul.f32 1.442695, %v3990_v22 }
 0x2a3   :  { %1109 = vst.msk [vmem:[#allocation3 + $0x8] sm:$0xff] %vm25_vm1, %v1076_v55  ;;  %v3976_v26 = vsub.f32 %v3974_v42, %v3975_v30 }
 0x2a4   :  { %v1046_v0 = vpop.xlane.xlu1 %1045  ;;  %v1946_v7 = vadd.f32 %v1945_v45, %v1944_v23  ;;  %v2178_v24 = vpop.eup %2177  ;;  %v3979_v45 = vsub.f32 %v3977_v1, %v3978_v20  ;;  %v956_v1 = vld [vmem:[#allocation3 + $0x48] sm:$0xff] }
 0x2a5   :  { %v1092_v56 = vadd.f32 %v1046_v0, %v996_v53  ;;  %v983_v34 = vmul.f32 %v2178_v24, %v951_v50  ;;  %v649_v54 = vmul.f32 1.442695, %v3976_v26  ;;  %v3986_v24 = vld [vmem:[#allocation43_spill] sm:$0xff]  ;;  %v3987_v50 = vld [vmem:[#allocation45_spill] sm:$0xff]  ;;  %v1567_v26 = vld [vmem:[#allocation3 + $0x18] sm:$0xff] }
 0x2a6   :  { %v1948_v27 = vadd.f32 %v1947_v32, %v1946_v7 }
 0x2a7   :  { %1125 = vst.msk [vmem:[#allocation3 + $0x88] sm:$0xff] %vm25_vm1, %v1092_v56  ;;  %2187 = vpow2.f32 %v649_v54 }
 0x2a8   :  { %v1950_v55 = vadd.f32 %v1949_v5, %v1948_v27  ;;  %v3983_v5 = vld [vmem:[#allocation41_spill] sm:$0xff] }
 0x2a9   :  { %v2180_v3 = vpop.eup %2179  ;;  %v3985_v15 = vsub.f32 %v3983_v5, %v3984_v38  ;;  %v3991_v38 = vsub.f32 %v3203_v47, %v3211_v43  ;;  %v1533_v47 = vld [vmem:[#allocation2 + $0x8] sm:$0xff] }
 0x2aa   :  { %v1952_v51 = vadd.f32 %v1951_v36, %v1950_v55  ;;  %v999_v52 = vmul.f32 %v2180_v3, %v967_v12  ;;  %v2182_v56 = vpop.eup %2181  ;;  %v3988_v55 = vsub.f32 %v3986_v24, %v3987_v50 }
 0x2ab   :  { %v986_v16 = vmul.f32 %v2182_v56, %v954_v41  ;;  %v2184_v23 = vpop.eup %2183  ;;  %v671_v27 = vmul.f32 1.442695, %v3985_v15  ;;  %v968_v41 = vld [vmem:[#allocation3 + $0xa8] sm:$0xff]  ;;  %v651_v15 = vmul.f32 1.442695, %v3991_v38 }
 0x2ac   :  { %v1024_v9 = vpop.xlane.xlu0 %1023  ;;  %v1954_v4 = vadd.f32 %v1953_v57, %v1952_v51  ;;  %v984_v32 = vmul.f32 %v2184_v23, %v952_v2  ;;  %v645_v57 = vmul.f32 1.442695, %v3988_v55  ;;  %v2186_v49 = vpop.eup %2185  ;;  %v969_v2 = vld [vmem:[#allocation3 + $0xb0] sm:$0xff] }
 0x2ad   :  { %v1081_v59 = vadd.f32 %v1024_v9, %v985_v44  ;;  %v669_v44 = vmul.f32 1.442695, %v3979_v45  ;;  %v3982_v9 = vsub.f32 %v3980_v62, %v3981_v31  ;;  %v989_v10 = vmul.f32 %v2186_v49, %v957_v8  ;;  %v3992_v49 = vld [vmem:[#allocation51_spill] sm:$0xff]  ;;  %v3993_v8 = vld [vmem:[#allocation52_spill] sm:$0xff] }
 0x2ae   :  { %1955 = vadd.xlane.f32.xlu1 %v1954_v4  ;;  %v1564_v4 = vld [vmem:[#allocation3] sm:$0xff] }
 0x2af   :  { %1114 = vst.msk [vmem:[#allocation3 + $0x30] sm:$0xff] %vm25_vm1, %v1081_v59  ;;  %v643_v7 = vmul.f32 1.442695, %v3982_v9  ;;  %2189 = vpow2.f32 %v669_v44 }
 0x2b1   :  { %2191 = vpow2.f32 %v643_v7  ;;  %v2188_v51 = vpop.eup %2187 }
 0x2b2   :  { %2193 = vpow2.f32 %v671_v27  ;;  %v1190_v27 = vld [vmem:[#allocation4 + $0x68] sm:$0xff] }
 0x2b3   :  { %2195 = vpow2.f32 %v645_v57 }
 0x2b4   :  { %v1020_v53 = vpop.xlane.xlu1 %1019 }
 0x2b5   :  { %v1079_v0 = vadd.f32 %v1020_v53, %v983_v34  ;;  %v1565_v34 = vld [vmem:[#allocation3 + $0x8] sm:$0xff]  ;;  %v958_v53 = vld [vmem:[#allocation3 + $0x58] sm:$0xff] }
 0x2b6   :  { %2197 = vlog2.f32 %v1565_v34  ;;  %v1570_v55 = vld [vmem:[#allocation3 + $0x30] sm:$0xff] }
 0x2b7   :  { %1112 = vst.msk [vmem:[#allocation3 + $0x20] sm:$0xff] %vm25_vm1, %v1079_v0  ;;  %2199 = vlog2.f32 %v1564_v4 }
 0x2b8   :  { %v1052_v11 = vpop.xlane.xlu1 %1051 }
 0x2b9   :  { %v1095_v40 = vadd.f32 %v1052_v11, %v999_v52  ;;  %v2190_v0 = vpop.eup %2189  ;;  %v990_v52 = vmul.f32 %v2188_v51, %v958_v53 }
 0x2bb   :  { %1128 = vst.msk [vmem:[#allocation3 + $0xa0] sm:$0xff] %vm25_vm1, %v1095_v40  ;;  %v2192_v56 = vpop.eup %2191  ;;  %v955_v40 = vld [vmem:[#allocation3 + $0x40] sm:$0xff] }
 0x2bc   :  { %v1026_v13 = vpop.xlane.xlu1 %1025  ;;  %v987_v42 = vmul.f32 %v2192_v56, %v955_v40  ;;  %v1532_v56 = vld [vmem:[#allocation2] sm:$0xff]  ;;  %v3995_v40 = vld [vmem:[#allocation55_spill] sm:$0xff] }
 0x2bd   :  { %v1082_v19 = vadd.f32 %v1026_v13, %v986_v16  ;;  %v1566_v16 = vld [vmem:[#allocation3 + $0x10] sm:$0xff]  ;;  %v2194_v13 = vpop.eup %2193 }
 0x2be   :  { %v2196_v30 = vpop.eup %2195  ;;  %2201 = vlog2.f32 %v1566_v16  ;;  %v1568_v44 = vld [vmem:[#allocation3 + $0x20] sm:$0xff]  ;;  %v1001_v25 = vmul.f32 %v2194_v13, %v969_v2 }
 0x2bf   :  { %1115 = vst.msk [vmem:[#allocation3 + $0x38] sm:$0xff] %vm25_vm1, %v1082_v19  ;;  %v1000_v19 = vmul.f32 %v2190_v0, %v968_v41  ;;  %2203 = vpow2.f32 %v655_v39  ;;  %v988_v62 = vmul.f32 %v2196_v30, %v956_v1  ;;  %v961_v0 = vld [vmem:[#allocation3 + $0x70] sm:$0xff]  ;;  %v1725_v30 = vld [vmem:[#allocation4 + $0x8] sm:$0xff] }
 0x2c0   :  { %2205 = vlog2.f32 %v1567_v26 }
 0x2c1   :  { %2207 = vlog2.f32 %v1568_v44  ;;  %v1534_v44 = vld [vmem:[#allocation2 + $0x10] sm:$0xff] }
 0x2c4   :  { %v1022_v59 = vpop.xlane.xlu1 %1021 }
 0x2c5   :  { %v1080_v36 = vadd.f32 %v1022_v59, %v984_v32  ;;  %v2198_v32 = vpop.eup %2197 }
 0x2c6   :  { %v1599_v24 = vmul.f32 0.6931472, %v2198_v32 }
 0x2c7   :  { %1113 = vst.msk [vmem:[#allocation3 + $0x28] sm:$0xff] %vm25_vm1, %v1080_v36  ;;  %v2200_v36 = vpop.eup %2199 }
 0x2c8   :  { %v1597_v34 = vmul.f32 0.6931472, %v2200_v36  ;;  %v2202_v43 = vpop.eup %2201  ;;  %v1535_v36 = vld [vmem:[#allocation2 + $0x18] sm:$0xff] }
 0x2c9   :  { %v2204_v53 = vpop.eup %2203  ;;  %v1601_v39 = vmul.f32 0.6931472, %v2202_v43 }
 0x2ca   :  { %v1660_v16 = vadd.f32 %v1597_v34, %v1532_v56  ;;  %v993_v26 = vmul.f32 %v2204_v53, %v961_v0  ;;  %v4002_v53 = vld [vmem:[#allocation66_spill] sm:$0xff] }
 0x2cc   :  { %v1032_v3 = vpop.xlane.xlu1 %1031 }
 0x2cd   :  { %v1085_v12 = vadd.f32 %v1032_v3, %v989_v10  ;;  %v3994_v10 = vsub.f32 %v3992_v49, %v3993_v8  ;;  %v1191_v3 = vld [vmem:[#allocation4 + $0x70] sm:$0xff]  ;;  %v959_v8 = vld [vmem:[#allocation3 + $0x60] sm:$0xff] }
 0x2ce   :  { %v1569_v31 = vld [vmem:[#allocation3 + $0x28] sm:$0xff] }
 0x2cf   :  { %1118 = vst.msk [vmem:[#allocation3 + $0x50] sm:$0xff] %vm25_vm1, %v1085_v12  ;;  %2209 = vlog2.f32 %v1569_v31  ;;  %v657_v51 = vmul.f32 1.442695, %v3994_v10  ;;  %v1661_v12 = vadd.f32 %v1599_v24, %v1533_v47  ;;  %v3999_v31 = vld [vmem:[#allocation31_spill] sm:$0xff]  ;;  %v4001_v47 = vld [vmem:[#allocation65_spill] sm:$0xff] }
 0x2d0   :  { %v1034_v11 = vpop.xlane.xlu1 %1033  ;;  %2211 = vpow2.f32 %v651_v15  ;;  %v1726_v10 = vld [vmem:[#allocation4 + $0x10] sm:$0xff] }
 0x2d1   :  { %v1086_v48 = vadd.f32 %v1034_v11, %v990_v52  ;;  %2213 = vlog2.f32 %v1570_v55  ;;  %v2206_v52 = vpop.eup %2205  ;;  %v1571_v11 = vld [vmem:[#allocation3 + $0x38] sm:$0xff] }
 0x2d2   :  { %2215 = vpow2.f32 %v657_v51  ;;  %v1536_v51 = vld [vmem:[#allocation2 + $0x20] sm:$0xff] }
 0x2d3   :  { %1119 = vst.msk [vmem:[#allocation3 + $0x58] sm:$0xff] %vm25_vm1, %v1086_v48  ;;  %v3996_v48 = vld [vmem:[#allocation57_spill] sm:$0xff]  ;;  %2217 = vlog2.f32 %v1571_v11  ;;  %v1194_v11 = vld [vmem:[#allocation4 + $0x88] sm:$0xff] }
 0x2d4   :  { %v1054_v54 = vpop.xlane.xlu1 %1053  ;;  %v1028_v23 = vpop.xlane.xlu0 %1027  ;;  %v3997_v60 = vsub.f32 %v3995_v40, %v3996_v48  ;;  %v4004_v40 = vld [vmem:[#allocation40_spill] sm:$0xff] }
 0x2d5   :  { %v1096_v20 = vadd.f32 %v1054_v54, %v1000_v19  ;;  %v1083_v45 = vadd.f32 %v1028_v23, %v987_v42  ;;  %v1192_v19 = vld [vmem:[#allocation4 + $0x78] sm:$0xff]  ;;  %v2208_v42 = vpop.eup %2207  ;;  %v1603_v54 = vmul.f32 0.6931472, %v2206_v52  ;;  %v1757_v23 = vsub.f32 %v1661_v12, %v1725_v30 }
 0x2d6   :  { %v653_v22 = vmul.f32 1.442695, %v3997_v60  ;;  %v1605_v15 = vmul.f32 0.6931472, %v2208_v42  ;;  %v1574_v34 = vld [vmem:[#allocation3 + $0x50] sm:$0xff]  ;;  %v4003_v12 = vsub.f32 %v4001_v47, %v4002_v53  ;;  %v4005_v48 = vsub.f32 %v4004_v40, %v3053_v46 }
 0x2d7   :  { %1129 = vst.msk [vmem:[#allocation3 + $0xa8] sm:$0xff] %vm25_vm1, %v1096_v20  ;;  %1116 = vst.msk [vmem:[#allocation3 + $0x40] sm:$0xff] %vm25_vm1, %v1083_v45  ;;  %v1789_v55 = vmul.f32 %v1757_v23, %v3326_v35  ;;  %v1727_v35 = vld [vmem:[#allocation4 + $0x18] sm:$0xff]  ;;  %v1730_v40 = vld [vmem:[#allocation4 + $0x30] sm:$0xff] }
 0x2d8   :  { %v1056_v9 = vpop.xlane.xlu1 %1055  ;;  %v1030_v7 = vpop.xlane.xlu0 %1029  ;;  %v1664_v56 = vadd.f32 %v1605_v15, %v1536_v51  ;;  %v681_v60 = vmul.f32 1.442695, %v4005_v48  ;;  %v4014_v48 = vld [vmem:[#allocation69_spill] sm:$0xff] }
 0x2d9   :  { %v1097_v59 = vadd.f32 %v1056_v9, %v1001_v25  ;;  %v1084_v5 = vadd.f32 %v1030_v7, %v988_v62  ;;  %v2210_v45 = vpop.eup %2209  ;;  %v1724_v25 = vld [vmem:[#allocation4] sm:$0xff] }
 0x2da   :  { %v3998_v62 = vld [vmem:[#allocation29_spill] sm:$0xff]  ;;  %v1756_v38 = vsub.f32 %v1660_v16, %v1724_v25  ;;  %v2212_v24 = vpop.eup %2211 }
 0x2db   :  { %1130 = vst.msk [vmem:[#allocation3 + $0xb0] sm:$0xff] %vm25_vm1, %v1097_v59  ;;  %1117 = vst.msk [vmem:[#allocation3 + $0x48] sm:$0xff] %vm25_vm1, %v1084_v5  ;;  %v4000_v9 = vsub.f32 %v3998_v62, %v3999_v31  ;;  %v1662_v5 = vadd.f32 %v1601_v39, %v1534_v44  ;;  %v2214_v43 = vpop.eup %2213  ;;  %v4007_v39 = vld [vmem:[#allocation49_spill] sm:$0xff] }
 0x2dc   :  { %v1428_v50 = vpop.xlane.xlu0 %1427  ;;  %v1788_v52 = vmul.f32 %v1756_v38, %v3317_v61  ;;  %v2216_v42 = vpop.eup %2215  ;;  %v4010_v38 = vld [vmem:[#allocation61_spill] sm:$0xff] }
 0x2dd   :  { %v1478_v57 = vadd.f32 %v1428_v50, %v1190_v27  ;;  %v673_v7 = vmul.f32 1.442695, %v4000_v9  ;;  %v1193_v27 = vld [vmem:[#allocation4 + $0x80] sm:$0xff]  ;;  %v1663_v50 = vadd.f32 %v1603_v54, %v1535_v36  ;;  %v1758_v0 = vsub.f32 %v1662_v5, %v1726_v10  ;;  %v2218_v44 = vpop.eup %2217  ;;  %v1575_v9 = vld [vmem:[#allocation3 + $0x58] sm:$0xff]  ;;  %v4009_v5 = vld [vmem:[#allocation59_spill] sm:$0xff] }
 0x2de   :  { %v1572_v13 = vld [vmem:[#allocation3 + $0x40] sm:$0xff]  ;;  %v1820_v62 = vsel %vm25_vm1, %v1788_v52, 0.0  ;;  %v4011_v15 = vsub.f32 %v4009_v5, %v4010_v38  ;;  %v1611_v52 = vmul.f32 0.6931472, %v2218_v44 }
 0x2df   :  { %1510 = vst.msk [vmem:[#allocation4 + $0x68] sm:$0xff] %vm25_vm1, %v1478_v57  ;;  %2219 = vlog2.f32 %v1572_v13  ;;  %v1607_v57 = vmul.f32 0.6931472, %v2210_v45  ;;  %v1759_v30 = vsub.f32 %v1663_v50, %v1727_v35  ;;  %v1790_v25 = vmul.f32 %v1758_v0, %v3336_v63  ;;  %v1538_v63 = vld [vmem:[#allocation2 + $0x30] sm:$0xff] }
 0x2e0   :  { %v1430_v4 = vpop.xlane.xlu0 %1429  ;;  %2221 = vpow2.f32 %v653_v22  ;;  %v4006_v22 = vld [vmem:[#allocation47_spill] sm:$0xff] }
 0x2e1   :  { %v1479_v41 = vadd.f32 %v1430_v4, %v1191_v3  ;;  %v675_v4 = vmul.f32 1.442695, %v4003_v12  ;;  %v4008_v16 = vsub.f32 %v4006_v22, %v4007_v39 }
 0x2e2   :  { %v1573_v2 = vld [vmem:[#allocation3 + $0x48] sm:$0xff] }
 0x2e3   :  { %1511 = vst.msk [vmem:[#allocation4 + $0x70] sm:$0xff] %vm25_vm1, %v1479_v41  ;;  %2223 = vlog2.f32 %v1573_v2  ;;  %v1537_v41 = vld [vmem:[#allocation2 + $0x28] sm:$0xff]  ;;  %v677_v13 = vmul.f32 1.442695, %v4008_v16  ;;  %v962_v2 = vld [vmem:[#allocation3 + $0x78] sm:$0xff] }
 0x2e4   :  { %v1040_v1 = vpop.xlane.xlu1 %1039  ;;  %v1432_v20 = vpop.xlane.xlu0 %1431  ;;  %2225 = vpow2.f32 %v673_v7  ;;  %v1665_v61 = vadd.f32 %v1607_v57, %v1537_v41  ;;  %v1195_v7 = vld [vmem:[#allocation4 + $0x90] sm:$0xff] }
 0x2e5   :  { %v1089_v32 = vadd.f32 %v1040_v1, %v993_v26  ;;  %v1480_v59 = vadd.f32 %v1432_v20, %v1192_v19  ;;  %v991_v19 = vmul.f32 %v2212_v24, %v959_v8  ;;  %v1821_v26 = vsel %vm25_vm1, %v1789_v55, 0.0  ;;  %v1728_v1 = vld [vmem:[#allocation4 + $0x20] sm:$0xff]  ;;  %v4012_v55 = vld [vmem:[#allocation68_spill] sm:$0xff] }
 0x2e6   :  { %2227 = vlog2.f32 %v1574_v34  ;;  %v1609_v20 = vmul.f32 0.6931472, %v2214_v43  ;;  %v1760_v31 = vsub.f32 %v1664_v56, %v1728_v1  ;;  %v1822_v36 = vadd.f32 %v1821_v26, %v1820_v62  ;;  %v1540_v26 = vld [vmem:[#allocation2 + $0x40] sm:$0xff] }
 0x2e7   :  { %1122 = vst.msk [vmem:[#allocation3 + $0x70] sm:$0xff] %vm25_vm1, %v1089_v32  ;;  %1512 = vst.msk [vmem:[#allocation4 + $0x78] sm:$0xff] %vm25_vm1, %v1480_v59  ;;  %2229 = vpow2.f32 %v675_v4  ;;  %v1729_v59 = vld [vmem:[#allocation4 + $0x28] sm:$0xff]  ;;  %v994_v24 = vmul.f32 %v2216_v42, %v962_v2  ;;  %v4013_v57 = vsub.f32 %v4012_v55, %v3201_v58  ;;  %v1791_v8 = vmul.f32 %v1759_v30, %v3349_v18  ;;  %v1196_v58 = vld [vmem:[#allocation4 + $0x98] sm:$0xff] }
 0x2e8   :  { %v1434_v49 = vpop.xlane.xlu0 %1433  ;;  %2231 = vpow2.f32 %v681_v60  ;;  %v1761_v10 = vsub.f32 %v1665_v61, %v1729_v59  ;;  %v3637_v47 = vadd.f32 %v1609_v20, %v1538_v63  ;;  %v1823_v4 = vsel %vm25_vm1, %v1790_v25, 0.0  ;;  %v4015_v60 = vld [vmem:[#allocation70_spill] sm:$0xff]  ;;  %v970_v42 = vld [vmem:[#allocation3 + $0xb8] sm:$0xff]  ;;  %v1580_v62 = vld [vmem:[#allocation3 + $0x80] sm:$0xff] }
 0x2e9   :  { %v1481_v3 = vadd.f32 %v1434_v49, %v1193_v27  ;;  %v2220_v32 = vpop.eup %2219  ;;  %v679_v27 = vmul.f32 1.442695, %v4011_v15  ;;  %2233 = vpow2.f32 %v677_v13  ;;  %v687_v49 = vmul.f32 1.442695, %v4013_v57  ;;  %v1539_v30 = vld [vmem:[#allocation2 + $0x38] sm:$0xff]  ;;  %v1541_v25 = vld [vmem:[#allocation2 + $0x48] sm:$0xff] }
 0x2ea   :  { %v2222_v50 = vpop.eup %2221  ;;  %2235 = vlog2.f32 %v1575_v9  ;;  %v1792_v0 = vmul.f32 %v1760_v31, %v3359_v37  ;;  %v1613_v56 = vmul.f32 0.6931472, %v2220_v32  ;;  %v1824_v18 = vadd.f32 %v1823_v4, %v1822_v36  ;;  %v971_v15 = vld [vmem:[#allocation3 + $0xc0] sm:$0xff]  ;;  %v1731_v36 = vld [vmem:[#allocation4 + $0x38] sm:$0xff] }
 0x2eb   :  { %1513 = vst.msk [vmem:[#allocation4 + $0x80] sm:$0xff] %vm25_vm1, %v1481_v3  ;;  %v960_v3 = vld [vmem:[#allocation3 + $0x68] sm:$0xff]  ;;  %2237 = vpow2.f32 %v679_v27  ;;  %v4016_v22 = vsub.f32 %v4014_v48, %v4015_v60  ;;  %v1793_v37 = vmul.f32 %v1761_v10, %v3372_v28  ;;  %v1825_v61 = vsel %vm25_vm1, %v1791_v8, 0.0  ;;  %v1197_v28 = vld [vmem:[#allocation4 + $0xa0] sm:$0xff] }
 0x2ec   :  { %v1036_v54 = vpop.xlane.xlu1 %1035  ;;  %v1436_v23 = vpop.xlane.xlu0 %1435  ;;  %v992_v35 = vmul.f32 %v2222_v50, %v960_v3  ;;  %2239 = vpow2.f32 %v687_v49  ;;  %v1827_v20 = vsel %vm25_vm1, %v1792_v0, 0.0  ;;  %v1826_v31 = vadd.f32 %v1825_v61, %v1824_v18  ;;  %v1582_v50 = vld [vmem:[#allocation3 + $0x90] sm:$0xff]  ;;  %v1581_v10 = vld [vmem:[#allocation3 + $0x88] sm:$0xff] }
 0x2ed   :  { %v1087_v46 = vadd.f32 %v1036_v54, %v991_v19  ;;  %v1482_v45 = vadd.f32 %v1436_v23, %v1194_v11  ;;  %v2224_v43 = vpop.eup %2223  ;;  %v683_v39 = vmul.f32 1.442695, %v4016_v22  ;;  %v1762_v54 = vsub.f32 %v3637_v47, %v1730_v40  ;;  %v1198_v47 = vld [vmem:[#allocation4 + $0xa8] sm:$0xff] }
 0x2ee   :  { %v2226_v11 = vpop.eup %2225  ;;  %v1578_v41 = vld [vmem:[#allocation3 + $0x70] sm:$0xff]  ;;  %v1615_v16 = vmul.f32 0.6931472, %v2224_v43  ;;  %v1829_v32 = vsel %vm25_vm1, %v1793_v37, 0.0  ;;  %v1828_v63 = vadd.f32 %v1827_v20, %v1826_v31  ;;  %v972_v18 = vld [vmem:[#allocation3 + $0xc8] sm:$0xff] }
 0x2ef   :  { %1120 = vst.msk [vmem:[#allocation3 + $0x60] sm:$0xff] %vm25_vm1, %v1087_v46  ;;  %1514 = vst.msk [vmem:[#allocation4 + $0x88] sm:$0xff] %vm25_vm1, %v1482_v45  ;;  %v1667_v46 = vadd.f32 %v1611_v52, %v1539_v30  ;;  %v1668_v45 = vadd.f32 %v1613_v56, %v1540_v26  ;;  %2241 = vlog2.f32 %v1578_v41  ;;  %v1002_v9 = vmul.f32 %v2226_v11, %v970_v42  ;;  %v1542_v52 = vld [vmem:[#allocation2 + $0x50] sm:$0xff]  ;;  %v1583_v41 = vld [vmem:[#allocation3 + $0x98] sm:$0xff] }
 0x2f0   :  { %v1042_v51 = vpop.xlane.xlu1 %1041  ;;  %v1438_v34 = vpop.xlane.xlu0 %1437  ;;  %v1669_v59 = vadd.f32 %v1615_v16, %v1541_v25  ;;  %v1830_v4 = vadd.f32 %v1829_v32, %v1828_v63  ;;  %v1584_v42 = vld [vmem:[#allocation3 + $0xa0] sm:$0xff]  ;;  %v4017_v30 = vld [vmem:[#allocation60_spill] sm:$0xff]  ;;  %v4018_v26 = vld [vmem:[#allocation62_spill] sm:$0xff] }
 0x2f1   :  { %v1090_v53 = vadd.f32 %v1042_v51, %v994_v24  ;;  %v1483_v12 = vadd.f32 %v1438_v34, %v1195_v7  ;;  %v2228_v1 = vpop.eup %2227  ;;  %v1732_v24 = vld [vmem:[#allocation4 + $0x40] sm:$0xff]  ;;  %v1794_v51 = vmul.f32 %v1762_v54, %v3386_v29  ;;  %v1763_v34 = vsub.f32 %v1667_v46, %v1731_v36  ;;  %v1734_v20 = vld [vmem:[#allocation4 + $0x50] sm:$0xff]  ;;  %v4021_v36 = vld [vmem:[#allocation54_spill] sm:$0xff] }
 0x2f2   :  { %v2230_v7 = vpop.eup %2229  ;;  %v1617_v55 = vmul.f32 0.6931472, %v2228_v1  ;;  %v1764_v3 = vsub.f32 %v1668_v45, %v1732_v24  ;;  %v4019_v61 = vsub.f32 %v4017_v30, %v4018_v26  ;;  %v973_v45 = vld [vmem:[#allocation3 + $0xd0] sm:$0xff]  ;;  %v1544_v63 = vld [vmem:[#allocation2 + $0x60] sm:$0xff] }
 0x2f3   :  { %1123 = vst.msk [vmem:[#allocation3 + $0x78] sm:$0xff] %vm25_vm1, %v1090_v53  ;;  %1515 = vst.msk [vmem:[#allocation4 + $0x90] sm:$0xff] %vm25_vm1, %v1483_v12  ;;  %v3653_v27 = vpop.eup %2231  ;;  %v1733_v12 = vld [vmem:[#allocation4 + $0x48] sm:$0xff]  ;;  %v1003_v0 = vmul.f32 %v2230_v7, %v971_v15  ;;  %v1831_v22 = vsel %vm25_vm1, %v1794_v51, 0.0  ;;  %v4020_v15 = vld [vmem:[#allocation53_spill] sm:$0xff] }
 0x2f4   :  { %v1038_v13 = vpop.xlane.xlu1 %1037  ;;  %v1440_v19 = vpop.xlane.xlu0 %1439  ;;  %v1765_v56 = vsub.f32 %v1669_v59, %v1733_v12  ;;  %v1796_v16 = vmul.f32 %v1764_v3, %v3409_v14  ;;  %v685_v54 = vmul.f32 1.442695, %v4019_v61  ;;  %v4022_v24 = vsub.f32 %v4020_v15, %v4021_v36  ;;  %v1735_v12 = vld [vmem:[#allocation4 + $0x58] sm:$0xff] }
 0x2f5   :  { %v1088_v23 = vadd.f32 %v1038_v13, %v992_v35  ;;  %v1484_v2 = vadd.f32 %v1440_v19, %v1196_v58  ;;  %v2234_v8 = vpop.eup %2233  ;;  %v1670_v35 = vadd.f32 %v1617_v55, %v1542_v52  ;;  %v1199_v19 = vld [vmem:[#allocation4 + $0xb0] sm:$0xff]  ;;  %v1547_v61 = vld [vmem:[#allocation2 + $0x78] sm:$0xff] }
 0x2f6   :  { %v1576_v44 = vld [vmem:[#allocation3 + $0x60] sm:$0xff]  ;;  %v2236_v53 = vpop.eup %2235 }
 0x2f7   :  { %2243 = vlog2.f32 %v1576_v44  ;;  %1121 = vst.msk [vmem:[#allocation3 + $0x68] sm:$0xff] %vm25_vm1, %v1088_v23  ;;  %1516 = vst.msk [vmem:[#allocation4 + $0x98] sm:$0xff] %vm25_vm1, %v1484_v2  ;;  %v2238_v29 = vpop.eup %2237  ;;  %v1619_v37 = vmul.f32 0.6931472, %v2236_v53  ;;  %v1832_v23 = vadd.f32 %v1831_v22, %v1830_v4  ;;  %v1004_v2 = vmul.f32 %v2234_v8, %v972_v18  ;;  %v1736_v4 = vld [vmem:[#allocation4 + $0x60] sm:$0xff]  ;;  %v1546_v22 = vld [vmem:[#allocation2 + $0x70] sm:$0xff] }
 0x2f8   :  { %2245 = vpow2.f32 %v683_v39  ;;  %v1058_v5 = vpop.xlane.xlu1 %1057  ;;  %v1442_v38 = vpop.xlane.xlu0 %1441  ;;  %v1795_v39 = vmul.f32 %v1763_v34, %v3400_v21  ;;  %v1797_v21 = vmul.f32 %v1765_v56, %v3422_v17  ;;  %v1766_v25 = vsub.f32 %v1670_v35, %v1734_v20  ;;  %v1200_v17 = vld [vmem:[#allocation4 + $0xb8] sm:$0xff]  ;;  %v1201_v35 = vld [vmem:[#allocation4 + $0xc0] sm:$0xff] }
 0x2f9   :  { %v1098_v57 = vadd.f32 %v1058_v5, %v1002_v9  ;;  %v1485_v49 = vadd.f32 %v1442_v38, %v1197_v28  ;;  %2247 = vlog2.f32 %v1580_v62  ;;  %v3658_v60 = vpop.eup %2239  ;;  %v1543_v28 = vld [vmem:[#allocation2 + $0x58] sm:$0xff]  ;;  %v1585_v9 = vld [vmem:[#allocation3 + $0xa8] sm:$0xff]  ;;  %v1835_v5 = vsel %vm25_vm1, %v1796_v16, 0.0 }
 0x2fa   :  { %v1579_v43 = vld [vmem:[#allocation3 + $0x78] sm:$0xff]  ;;  %v2242_v1 = vpop.eup %2241  ;;  %v1833_v32 = vsel %vm25_vm1, %v1795_v39, 0.0  ;;  %v1671_v59 = vadd.f32 %v1619_v37, %v1543_v28  ;;  %v1005_v55 = vmul.f32 %v2238_v29, %v973_v45  ;;  %v1798_v56 = vmul.f32 %v1766_v25, %v3436_v33 }
 0x2fb   :  { %2249 = vlog2.f32 %v1579_v43  ;;  %1131 = vst.msk [vmem:[#allocation3 + $0xb8] sm:$0xff] %vm25_vm1, %v1098_v57  ;;  %1517 = vst.msk [vmem:[#allocation4 + $0xa0] sm:$0xff] %vm25_vm1, %v1485_v49  ;;  %v1586_v57 = vld [vmem:[#allocation3 + $0xb0] sm:$0xff]  ;;  %v1834_v49 = vadd.f32 %v1833_v32, %v1832_v23  ;;  %v974_v43 = vld [vmem:[#allocation3 + $0xd8] sm:$0xff] }
 0x2fc   :  { %2251 = vlog2.f32 %v1582_v50  ;;  %v1060_v58 = vpop.xlane.xlu1 %1059  ;;  %v1444_v11 = vpop.xlane.xlu0 %1443  ;;  %v689_v50 = vmul.f32 1.442695, %v4022_v24  ;;  %v1767_v18 = vsub.f32 %v1671_v59, %v1735_v12  ;;  %v1006_v39 = vmul.f32 %v3653_v27, %v974_v43  ;;  %v1203_v27 = vld [vmem:[#allocation4 + $0xd0] sm:$0xff]  ;;  %v976_v24 = vld [vmem:[#allocation3 + $0xe8] sm:$0xff] }
 0x2fd   :  { %2253 = vlog2.f32 %v1581_v10  ;;  %v1099_v40 = vadd.f32 %v1060_v58, %v1003_v0  ;;  %v1486_v48 = vadd.f32 %v1444_v11, %v1198_v47  ;;  %v1625_v10 = vmul.f32 0.6931472, %v2242_v1 }
 0x2fe   :  { %v1577_v13 = vld [vmem:[#allocation3 + $0x68] sm:$0xff]  ;;  %v1837_v47 = vsel %vm25_vm1, %v1797_v21, 0.0  ;;  %v1836_v58 = vadd.f32 %v1835_v5, %v1834_v49  ;;  %v1839_v1 = vsel %vm25_vm1, %v1798_v56, 0.0  ;;  %v1548_v5 = vld [vmem:[#allocation2 + $0x80] sm:$0xff] }
 0x2ff   :  { %2255 = vlog2.f32 %v1577_v13  ;;  %1132 = vst.msk [vmem:[#allocation3 + $0xc0] sm:$0xff] %vm25_vm1, %v1099_v40  ;;  %1518 = vst.msk [vmem:[#allocation4 + $0xa8] sm:$0xff] %vm25_vm1, %v1486_v48  ;;  %v3683_v16 = vadd.f32 %v1625_v10, %v1546_v22  ;;  %v1737_v49 = vld [vmem:[#allocation4 + $0x68] sm:$0xff] }
 0x300   :  { %v1062_v46 = vpop.xlane.xlu1 %1061  ;;  %v1446_v14 = vpop.xlane.xlu0 %1445  ;;  %2257 = vlog2.f32 %v1583_v41  ;;  %v1838_v37 = vadd.f32 %v1837_v47, %v1836_v58  ;;  %v1741_v47 = vld [vmem:[#allocation4 + $0x88] sm:$0xff] }
 0x301   :  { %v2244_v44 = vpop.eup %2243  ;;  %v1100_v62 = vadd.f32 %v1062_v46, %v1004_v2  ;;  %v1487_v31 = vadd.f32 %v1446_v14, %v1199_v19  ;;  %2259 = vlog2.f32 %v1584_v42  ;;  %v975_v42 = vld [vmem:[#allocation3 + $0xe0] sm:$0xff]  ;;  %v977_v2 = vld [vmem:[#allocation3 + $0xf0] sm:$0xff]  ;;  %v2287_v14 = vld [vmem:[%s3798_s4 + $0x58] sm:$0xff] }
 0x302   :  { %v3669_v7 = vpop.eup %2245  ;;  %v1621_v38 = vmul.f32 0.6931472, %v2244_v44  ;;  %2261 = vpow2.f32 %v685_v54  ;;  %v1587_v40 = vld [vmem:[#allocation3 + $0xb8] sm:$0xff]  ;;  %v1799_v45 = vmul.f32 %v2287_v14, %v1767_v18  ;;  %v2288_v44 = vld [vmem:[%s3798_s4 + $0x60] sm:$0xff]  ;;  %v1840_v59 = vadd.f32 %v1839_v1, %v1838_v37  ;;  %v2289_v22 = vld [vmem:[%s3798_s4 + $0x68] sm:$0xff] }
 0x303   :  { %1133 = vst.msk [vmem:[#allocation3 + $0xc8] sm:$0xff] %vm25_vm1, %v1100_v62  ;;  %1519 = vst.msk [vmem:[#allocation4 + $0xb0] sm:$0xff] %vm25_vm1, %v1487_v31  ;;  %v2248_v8 = vpop.eup %2247  ;;  %2263 = vlog2.f32 %v1585_v9  ;;  %v1545_v62 = vld [vmem:[#allocation2 + $0x68] sm:$0xff]  ;;  %v1738_v31 = vld [vmem:[#allocation4 + $0x70] sm:$0xff]  ;;  %v1007_v9 = vmul.f32 %v3669_v7, %v975_v42  ;;  %v1009_v36 = vmul.f32 %v3658_v60, %v977_v2 }
 0x304   :  { %v1672_v51 = vadd.f32 %v1621_v38, %v1544_v63  ;;  %v1064_v34 = vpop.xlane.xlu1 %1063  ;;  %v1448_v3 = vpop.xlane.xlu0 %1447  ;;  %2265 = vlog2.f32 %v1586_v57  ;;  %v1629_v33 = vmul.f32 0.6931472, %v2248_v8  ;;  %v1739_v8 = vld [vmem:[#allocation4 + $0x78] sm:$0xff]  ;;  %v2290_v37 = vld [vmem:[%s3798_s4 + $0x70] sm:$0xff]  ;;  %v1552_v2 = vld [vmem:[#allocation2 + $0xa0] sm:$0xff] }
 0x305   :  { %v2250_v53 = vpop.eup %2249  ;;  %v1101_v0 = vadd.f32 %v1064_v34, %v1005_v55  ;;  %v1488_v52 = vadd.f32 %v1448_v3, %v1200_v17  ;;  %2267 = vpow2.f32 %v689_v50  ;;  %v1549_v50 = vld [vmem:[#allocation2 + $0x88] sm:$0xff]  ;;  %v1770_v55 = vsub.f32 %v3683_v16, %v1738_v31 }
 0x306   :  { %v2252_v11 = vpop.eup %2251  ;;  %v1768_v29 = vsub.f32 %v1672_v51, %v1736_v4  ;;  %v1627_v41 = vmul.f32 0.6931472, %v2250_v53  ;;  %v1588_v30 = vld [vmem:[#allocation3 + $0xc0] sm:$0xff]  ;;  %2269 = vlog2.f32 %v1587_v40  ;;  %v1676_v10 = vadd.f32 %v1629_v33, %v1548_v5 }
 0x307   :  { %v2254_v48 = vpop.eup %2253  ;;  %1134 = vst.msk [vmem:[#allocation3 + $0xd0] sm:$0xff] %vm25_vm1, %v1101_v0  ;;  %1520 = vst.msk [vmem:[#allocation4 + $0xb8] sm:$0xff] %vm25_vm1, %v1488_v52  ;;  %2271 = vlog2.f32 %v1588_v30  ;;  %v1633_v63 = vmul.f32 0.6931472, %v2252_v11  ;;  %v1740_v51 = vld [vmem:[#allocation4 + $0x80] sm:$0xff]  ;;  %v1841_v0 = vsel %vm25_vm1, %v1799_v45, 0.0  ;;  %v1802_v16 = vmul.f32 %v2290_v37, %v1770_v55 }
 0x308   :  { %v1066_v13 = vpop.xlane.xlu1 %1065  ;;  %v1450_v19 = vpop.xlane.xlu0 %1449  ;;  %v3686_v46 = vadd.f32 %v1627_v41, %v1547_v61  ;;  %v1800_v28 = vmul.f32 %v2288_v44, %v1768_v29  ;;  %v1631_v32 = vmul.f32 0.6931472, %v2254_v48  ;;  %v1205_v53 = vld [vmem:[#allocation4 + $0xe0] sm:$0xff]  ;;  %v1842_v11 = vadd.f32 %v1841_v0, %v1840_v59  ;;  %v1550_v48 = vld [vmem:[#allocation2 + $0x90] sm:$0xff]  ;;  %v978_v59 = vld [vmem:[#allocation3 + $0xf8] sm:$0xff] }
 0x309   :  { %v2256_v26 = vpop.eup %2255  ;;  %v1102_v54 = vadd.f32 %v1066_v13, %v1006_v39  ;;  %v1489_v23 = vadd.f32 %v1450_v19, %v1201_v35  ;;  %v1772_v29 = vsub.f32 %v1676_v10, %v1740_v51  ;;  %v1551_v19 = vld [vmem:[#allocation2 + $0x98] sm:$0xff]  ;;  %v1742_v30 = vld [vmem:[#allocation4 + $0x90] sm:$0xff]  ;;  %v1678_v1 = vadd.f32 %v1633_v63, %v1550_v48  ;;  %v1744_v63 = vld [vmem:[#allocation4 + $0xa0] sm:$0xff] }
 0x30a   :  { %v2258_v20 = vpop.eup %2257  ;;  %v1623_v21 = vmul.f32 0.6931472, %v2256_v26  ;;  %v1771_v60 = vsub.f32 %v3686_v46, %v1739_v8  ;;  %v1843_v52 = vsel %vm25_vm1, %v1800_v28, 0.0  ;;  %v1677_v58 = vadd.f32 %v1631_v32, %v1549_v50  ;;  %v1589_v42 = vld [vmem:[#allocation3 + $0xc8] sm:$0xff]  ;;  %v1746_v0 = vld [vmem:[#allocation4 + $0xb0] sm:$0xff] }
 0x30b   :  { %v2260_v25 = vpop.eup %2259  ;;  %1135 = vst.msk [vmem:[#allocation3 + $0xd8] sm:$0xff] %vm25_vm1, %v1102_v54  ;;  %1521 = vst.msk [vmem:[#allocation4 + $0xc0] sm:$0xff] %vm25_vm1, %v1489_v23  ;;  %v1635_v3 = vmul.f32 0.6931472, %v2258_v20  ;;  %v1844_v61 = vadd.f32 %v1843_v52, %v1842_v11  ;;  %v1207_v23 = vld [vmem:[#allocation4 + $0xf0] sm:$0xff]  ;;  %v1774_v5 = vsub.f32 %v1678_v1, %v1742_v30  ;;  %v2293_v55 = vld [vmem:[%s3798_s4 + $0x88] sm:$0xff] }
 0x30c   :  { %v1673_v38 = vadd.f32 %v1623_v21, %v1545_v62  ;;  %v1068_v17 = vpop.xlane.xlu1 %1067  ;;  %v1454_v15 = vpop.xlane.xlu0 %1453  ;;  %v1637_v56 = vmul.f32 0.6931472, %v2260_v25  ;;  %v1773_v26 = vsub.f32 %v1677_v58, %v1741_v47  ;;  %v2291_v21 = vld [vmem:[%s3798_s4 + $0x78] sm:$0xff]  ;;  %v1553_v8 = vld [vmem:[#allocation2 + $0xa8] sm:$0xff] }
 0x30d   :  { %v2262_v57 = vpop.eup %2261  ;;  %v1103_v7 = vadd.f32 %v1068_v17, %v1007_v9  ;;  %v1491_v34 = vadd.f32 %v1454_v15, %v1203_v27  ;;  %v1679_v20 = vadd.f32 %v1635_v3, %v1551_v19  ;;  %v1803_v27 = vmul.f32 %v2291_v21, %v1771_v60  ;;  %v1743_v62 = vld [vmem:[#allocation4 + $0x98] sm:$0xff]  ;;  %v1745_v47 = vld [vmem:[#allocation4 + $0xa8] sm:$0xff]  ;;  %v1556_v19 = vld [vmem:[#allocation2 + $0xc0] sm:$0xff] }
 0x30e   :  { %v2264_v43 = vpop.eup %2263  ;;  %v1590_v12 = vld [vmem:[#allocation3 + $0xd0] sm:$0xff]  ;;  %v1769_v4 = vsub.f32 %v1673_v38, %v1737_v49  ;;  %v1008_v40 = vmul.f32 %v2262_v57, %v976_v24  ;;  %v1680_v25 = vadd.f32 %v1637_v56, %v1552_v2  ;;  %v2292_v38 = vld [vmem:[%s3798_s4 + $0x80] sm:$0xff]  ;;  %v1847_v15 = vsel %vm25_vm1, %v1802_v16, 0.0  ;;  %v1202_v48 = vld [vmem:[#allocation4 + $0xc8] sm:$0xff] }
 0x30f   :  { %1136 = vst.msk [vmem:[#allocation3 + $0xe0] sm:$0xff] %vm25_vm1, %v1103_v7  ;;  %1523 = vst.msk [vmem:[#allocation4 + $0xd0] sm:$0xff] %vm25_vm1, %v1491_v34  ;;  %2273 = vlog2.f32 %v1590_v12  ;;  %v2266_v18 = vpop.eup %2265  ;;  %v1639_v44 = vmul.f32 0.6931472, %v2264_v43  ;;  %v1804_v17 = vmul.f32 %v2292_v38, %v1772_v29  ;;  %v1805_v57 = vmul.f32 %v2293_v55, %v1773_v26  ;;  %v2294_v56 = vld [vmem:[%s3798_s4 + $0x90] sm:$0xff]  ;;  %v2295_v16 = vld [vmem:[%s3798_s4 + $0x98] sm:$0xff] }
 0x310   :  { %v1072_v41 = vpop.xlane.xlu1 %1071  ;;  %v1458_v35 = vpop.xlane.xlu0 %1457  ;;  %v1801_v39 = vmul.f32 %v2289_v22, %v1769_v4  ;;  %v1641_v28 = vmul.f32 0.6931472, %v2266_v18  ;;  %2275 = vlog2.f32 %v1589_v42  ;;  %v1775_v7 = vsub.f32 %v1679_v20, %v1743_v62  ;;  %v1554_v4 = vld [vmem:[#allocation2 + $0xb0] sm:$0xff]  ;;  %v1747_v21 = vld [vmem:[#allocation4 + $0xb8] sm:$0xff] }
 0x311   :  { %v1105_v33 = vadd.f32 %v1072_v41, %v1009_v36  ;;  %v1493_v13 = vadd.f32 %v1458_v35, %v1205_v53  ;;  %v2268_v54 = vpop.eup %2267  ;;  %v1849_v34 = vsel %vm25_vm1, %v1803_v27, 0.0  ;;  %v1681_v43 = vadd.f32 %v1639_v44, %v1553_v8  ;;  %v1555_v41 = vld [vmem:[#allocation2 + $0xb8] sm:$0xff] }
 0x312   :  { %v1845_v46 = vsel %vm25_vm1, %v1801_v39, 0.0  ;;  %v2270_v14 = vpop.eup %2269  ;;  %v1591_v45 = vld [vmem:[#allocation3 + $0xd8] sm:$0xff]  ;;  %v1010_v3 = vmul.f32 %v2268_v54, %v978_v59  ;;  %v1776_v52 = vsub.f32 %v1680_v25, %v1744_v63  ;;  %v1806_v58 = vmul.f32 %v2294_v56, %v1774_v5  ;;  %v2300_v56 = vld [vmem:[%s3798_s4 + $0xc0] sm:$0xff] }
 0x313   :  { %1138 = vst.msk [vmem:[#allocation3 + $0xf0] sm:$0xff] %vm25_vm1, %v1105_v33  ;;  %1525 = vst.msk [vmem:[#allocation4 + $0xe0] sm:$0xff] %vm25_vm1, %v1493_v13  ;;  %v1846_v31 = vadd.f32 %v1845_v46, %v1844_v61  ;;  %v2272_v36 = vpop.eup %2271  ;;  %v1643_v51 = vmul.f32 0.6931472, %v2270_v14  ;;  %2277 = vlog2.f32 %v1591_v45  ;;  %v1851_v11 = vsel %vm25_vm1, %v1804_v17, 0.0  ;;  %v1204_v14 = vld [vmem:[#allocation4 + $0xd8] sm:$0xff] }
 0x314   :  { %v1070_v9 = vpop.xlane.xlu1 %1069  ;;  %v1462_v32 = vpop.xlane.xlu0 %1461  ;;  %v1645_v60 = vmul.f32 0.6931472, %v2272_v36  ;;  %v1682_v35 = vadd.f32 %v1641_v28, %v1554_v4  ;;  %v1777_v37 = vsub.f32 %v1681_v43, %v1745_v47  ;;  %v1807_v33 = vmul.f32 %v2295_v16, %v1775_v7  ;;  %v2297_v28 = vld [vmem:[%s3798_s4 + $0xa8] sm:$0xff] }
 0x315   :  { %v1104_v24 = vadd.f32 %v1070_v9, %v1008_v40  ;;  %v1495_v50 = vadd.f32 %v1462_v32, %v1207_v23  ;;  %v1848_v49 = vadd.f32 %v1847_v15, %v1846_v31  ;;  %v1683_v39 = vadd.f32 %v1643_v51, %v1555_v41  ;;  %v2296_v23 = vld [vmem:[%s3798_s4 + $0xa0] sm:$0xff]  ;;  %v1558_v31 = vld [vmem:[#allocation2 + $0xd0] sm:$0xff]  ;;  %v2299_v51 = vld [vmem:[%s3798_s4 + $0xb8] sm:$0xff] }
 0x316   :  { %v1592_v10 = vld [vmem:[#allocation3 + $0xe0] sm:$0xff]  ;;  %v1853_v13 = vsel %vm25_vm1, %v1805_v57, 0.0  ;;  %v1778_v42 = vsub.f32 %v1682_v35, %v1746_v0  ;;  %v1684_v54 = vadd.f32 %v1645_v60, %v1556_v19  ;;  %v1808_v2 = vmul.f32 %v2296_v23, %v1776_v52  ;;  %v2298_v32 = vld [vmem:[%s3798_s4 + $0xb0] sm:$0xff]  ;;  %v1557_v4 = vld [vmem:[#allocation2 + $0xc8] sm:$0xff] }
 0x317   :  { %1137 = vst.msk [vmem:[#allocation3 + $0xe8] sm:$0xff] %vm25_vm1, %v1104_v24  ;;  %1527 = vst.msk [vmem:[#allocation4 + $0xf0] sm:$0xff] %vm25_vm1, %v1495_v50  ;;  %2279 = vlog2.f32 %v1592_v10  ;;  %v1850_v53 = vadd.f32 %v1849_v34, %v1848_v49  ;;  %v1855_v1 = vsel %vm25_vm1, %v1806_v58, 0.0  ;;  %v1779_v44 = vsub.f32 %v1683_v39, %v1747_v21  ;;  %v1748_v9 = vld [vmem:[#allocation4 + $0xc0] sm:$0xff]  ;;  %v1206_v49 = vld [vmem:[#allocation4 + $0xe8] sm:$0xff] }
 0x318   :  { %v1074_v12 = vpop.xlane.xlu1 %1073  ;;  %v1809_v25 = vmul.f32 %v2297_v28, %v1777_v37  ;;  %v1857_v62 = vsel %vm25_vm1, %v1807_v33, 0.0  ;;  %v1810_v59 = vmul.f32 %v2298_v32, %v1778_v42  ;;  %v1780_v36 = vsub.f32 %v1684_v54, %v1748_v9  ;;  %v1750_v43 = vld [vmem:[#allocation4 + $0xd0] sm:$0xff]  ;;  %v1208_v35 = vld [vmem:[#allocation4 + $0xf8] sm:$0xff] }
 0x319   :  { %v2274_v18 = vpop.eup %2273  ;;  %v1106_v29 = vadd.f32 %v1074_v12, %v1010_v3  ;;  %v1852_v40 = vadd.f32 %v1851_v11, %v1850_v53  ;;  %v1859_v24 = vsel %vm25_vm1, %v1808_v2, 0.0  ;;  %v1811_v7 = vmul.f32 %v2299_v51, %v1779_v44  ;;  %v1560_v3 = vld [vmem:[#allocation2 + $0xe0] sm:$0xff]  ;;  %v1559_v39 = vld [vmem:[#allocation2 + $0xd8] sm:$0xff]  ;;  %v1562_v19 = vld [vmem:[#allocation2 + $0xf0] sm:$0xff] }
 0x31a   :  { %v1594_v22 = vld [vmem:[#allocation3 + $0xf0] sm:$0xff]  ;;  %v1649_v61 = vmul.f32 0.6931472, %v2274_v18  ;;  %v2276_v46 = vpop.eup %2275  ;;  %v1861_v34 = vsel %vm25_vm1, %v1809_v25, 0.0  ;;  %v1863_v53 = vsel %vm25_vm1, %v1810_v59, 0.0  ;;  %v1812_v58 = vmul.f32 %v2300_v56, %v1780_v36  ;;  %v1752_v37 = vld [vmem:[#allocation4 + $0xe0] sm:$0xff] }
 0x31b   :  { %1139 = vst.msk [vmem:[#allocation3 + $0xf8] sm:$0xff] %vm25_vm1, %v1106_v29  ;;  %2281 = vlog2.f32 %v1594_v22  ;;  %v1854_v30 = vadd.f32 %v1853_v13, %v1852_v40  ;;  %v1647_v55 = vmul.f32 0.6931472, %v2276_v46  ;;  %v1865_v22 = vsel %vm25_vm1, %v1811_v7, 0.0  ;;  %v2303_v59 = vld [vmem:[%s3798_s4 + $0xd8] sm:$0xff]  ;;  %v2306_v7 = vld [vmem:[%s3798_s4 + $0xf0] sm:$0xff] }
 0x31c   :  { %v1452_v26 = vpop.xlane.xlu1 %1451  ;;  %v1686_v15 = vadd.f32 %v1649_v61, %v1558_v31  ;;  %v1867_v54 = vsel %vm25_vm1, %v1812_v58, 0.0 }
 0x31d   :  { %v1490_v20 = vadd.f32 %v1452_v26, %v1202_v48  ;;  %v1856_v27 = vadd.f32 %v1855_v1, %v1854_v30  ;;  %v2278_v38 = vpop.eup %2277  ;;  %v1685_v29 = vadd.f32 %v1647_v55, %v1557_v4  ;;  %v2301_v26 = vld [vmem:[%s3798_s4 + $0xd0] sm:$0xff] }
 0x31e   :  { %v1593_v45 = vld [vmem:[#allocation3 + $0xe8] sm:$0xff]  ;;  %v1651_v60 = vmul.f32 0.6931472, %v2278_v38  ;;  %v1782_v52 = vsub.f32 %v1686_v15, %v1750_v43  ;;  %v2304_v38 = vld [vmem:[%s3798_s4 + $0xe0] sm:$0xff] }
 0x31f   :  { %1522 = vst.msk [vmem:[#allocation4 + $0xc8] sm:$0xff] %vm25_vm1, %v1490_v20  ;;  %2283 = vlog2.f32 %v1593_v45  ;;  %v1858_v5 = vadd.f32 %v1857_v62, %v1856_v27  ;;  %v2302_v20 = vld [vmem:[%s3798_s4 + $0xc8] sm:$0xff]  ;;  %v1754_v62 = vld [vmem:[#allocation4 + $0xf0] sm:$0xff] }
 0x320   :  { %v1456_v17 = vpop.xlane.xlu1 %1455  ;;  %v1687_v42 = vadd.f32 %v1651_v60, %v1559_v39  ;;  %v1814_v61 = vmul.f32 %v2301_v26, %v1782_v52  ;;  %v1561_v45 = vld [vmem:[#allocation2 + $0xe8] sm:$0xff]  ;;  %v2307_v60 = vld [vmem:[%s3798_s4 + $0xf8] sm:$0xff] }
 0x321   :  { %v2280_v50 = vpop.eup %2279  ;;  %v1492_v63 = vadd.f32 %v1456_v17, %v1204_v14  ;;  %v1860_v57 = vadd.f32 %v1859_v24, %v1858_v5 }
 0x322   :  { %v1595_v8 = vld [vmem:[#allocation3 + $0xf8] sm:$0xff]  ;;  %v1653_v10 = vmul.f32 0.6931472, %v2280_v50  ;;  %v1871_v15 = vsel %vm25_vm1, %v1814_v61, 0.0 }
 0x323   :  { %1524 = vst.msk [vmem:[#allocation4 + $0xd8] sm:$0xff] %vm25_vm1, %v1492_v63  ;;  %2285 = vlog2.f32 %v1595_v8  ;;  %v1862_v47 = vadd.f32 %v1861_v34, %v1860_v57  ;;  %v1563_v63 = vld [vmem:[#allocation2 + $0xf8] sm:$0xff] }
 0x324   :  { %v1460_v12 = vpop.xlane.xlu1 %1459  ;;  %v1688_v0 = vadd.f32 %v1653_v10, %v1560_v3  ;;  %v2305_v10 = vld [vmem:[%s3798_s4 + $0xe8] sm:$0xff] }
 0x325   :  { %v2282_v11 = vpop.eup %2281  ;;  %v1494_v18 = vadd.f32 %v1460_v12, %v1206_v49  ;;  %v1864_v41 = vadd.f32 %v1863_v53, %v1862_v47 }
 0x326   :  { %v1657_v40 = vmul.f32 0.6931472, %v2282_v11  ;;  %v1749_v48 = vld [vmem:[#allocation4 + $0xc8] sm:$0xff]  ;;  %v1784_v30 = vsub.f32 %v1688_v0, %v1752_v37 }
 0x327   :  { %1526 = vst.msk [vmem:[#allocation4 + $0xe8] sm:$0xff] %vm25_vm1, %v1494_v18  ;;  %v1781_v16 = vsub.f32 %v1685_v29, %v1749_v48  ;;  %v1866_v33 = vadd.f32 %v1865_v22, %v1864_v41 }
 0x328   :  { %v1464_v13 = vpop.xlane.xlu1 %1463  ;;  %v1690_v1 = vadd.f32 %v1657_v40, %v1562_v19  ;;  %v1816_v17 = vmul.f32 %v2304_v38, %v1784_v30 }
 0x329   :  { %v2284_v23 = vpop.eup %2283  ;;  %v1496_v2 = vadd.f32 %v1464_v13, %v1208_v35  ;;  %v1813_v21 = vmul.f32 %v2302_v20, %v1781_v16  ;;  %v1868_v27 = vadd.f32 %v1867_v54, %v1866_v33 }
 0x32a   :  { %v1655_v46 = vmul.f32 0.6931472, %v2284_v23  ;;  %v1751_v14 = vld [vmem:[#allocation4 + $0xd8] sm:$0xff]  ;;  %v1786_v32 = vsub.f32 %v1690_v1, %v1754_v62  ;;  %v1875_v3 = vsel %vm25_vm1, %v1816_v17, 0.0 }
 0x32b   :  { %1528 = vst.msk [vmem:[#allocation4 + $0xf8] sm:$0xff] %vm25_vm1, %v1496_v2  ;;  %v1783_v44 = vsub.f32 %v1687_v42, %v1751_v14  ;;  %v1869_v28 = vsel %vm25_vm1, %v1813_v21, 0.0 }
 0x32c   :  { %v1689_v25 = vadd.f32 %v1655_v46, %v1561_v45  ;;  %v1870_v31 = vadd.f32 %v1869_v28, %v1868_v27  ;;  %v1818_v34 = vmul.f32 %v2306_v7, %v1786_v32 }
 0x32d   :  { %v2286_v9 = vpop.eup %2285  ;;  %v1815_v5 = vmul.f32 %v2303_v59, %v1783_v44 }
 0x32e   :  { %v1659_v36 = vmul.f32 0.6931472, %v2286_v9  ;;  %v1753_v24 = vld [vmem:[#allocation4 + $0xe8] sm:$0xff]  ;;  %v1872_v50 = vadd.f32 %v1871_v15, %v1870_v31  ;;  %v1879_v52 = vsel %vm25_vm1, %v1818_v34, 0.0 }
 0x32f   :  { %v1785_v55 = vsub.f32 %v1689_v25, %v1753_v24  ;;  %v1873_v57 = vsel %vm25_vm1, %v1815_v5, 0.0 }
 0x330   :  { %v1691_v49 = vadd.f32 %v1659_v36, %v1563_v63  ;;  %v1874_v8 = vadd.f32 %v1873_v57, %v1872_v50 }
 0x331   :  { %v1817_v51 = vmul.f32 %v2305_v10, %v1785_v55 }
 0x332   :  { %v1755_v43 = vld [vmem:[#allocation4 + $0xf8] sm:$0xff]  ;;  %v1876_v47 = vadd.f32 %v1875_v3, %v1874_v8 }
 0x333   :  { %v1787_v53 = vsub.f32 %v1691_v49, %v1755_v43  ;;  %v1877_v12 = vsel %vm25_vm1, %v1817_v51, 0.0 }
 0x334   :  { %v1878_v4 = vadd.f32 %v1877_v12, %v1876_v47 }
 0x335   :  { %v1819_v0 = vmul.f32 %v2307_v60, %v1787_v53 }
 0x336   :  { %v1880_v56 = vadd.f32 %v1879_v52, %v1878_v4 }
 0x337   :  { %v1881_v58 = vsel %vm25_vm1, %v1819_v0, 0.0  ;;  %vm1965_vm1 = vcmp.eq.s32.totalorder %v2564_v6, 1 }
 0x338   :  { %v1882_v11 = vadd.f32 %v1881_v58, %v1880_v56 }
 0x33a   :  { %1883 = vadd.xlane.f32.xlu0 %v1882_v11 }
 0x33b   :  { %v1956_v18 = vpop.xlane.xlu1 %1955 }
 0x33c   :  { %v1957_v29 = vrot.slane %v1956_v18, 4 }
 0x33e   :  { %v1958_v41 = vadd.f32 %v1957_v29, %v1956_v18 }
 0x340   :  { %v1959_v35 = vrot.slane %v1958_v41, 2 }
 0x342   :  { %v1960_v39 = vadd.f32 %v1959_v35, %v1958_v41 }
 0x344   :  { %v1961_v33 = vrot.slane %v1960_v39, 1 }
 0x346   :  { %v1962_v42 = vadd.f32 %v1961_v33, %v1960_v39 }
 0x3c7   :  { %v1884_v40 = vpop.xlane.xlu0 %1883 }
 0x3c8   :  { %v1885_v48 = vrot.slane %v1884_v40, 4 }
 0x3ca   :  { %v1886_v22 = vadd.f32 %v1885_v48, %v1884_v40 }
 0x3cc   :  { %v1887_v37 = vrot.slane %v1886_v22, 2 }
 0x3ce   :  { %v1888_v16 = vadd.f32 %v1887_v37, %v1886_v22 }
 0x3d0   :  { %v1889_v13 = vrot.slane %v1888_v16, 1 }
 0x3d2   :  { %v1890_v19 = vadd.f32 %v1889_v13, %v1888_v16 }
 0x3d4   :  { %2068 = vpush %v1890_v19 }
 0x3d5   :  { %2070 = vpush %v1962_v42 }
 0x405   :  { %s2069_s4 = spop %2068 }
 0x406   :  { %v1968_v30 = vstv %s2069_s4  ;;  %s2071_s29 = spop %2070 }
 0x407   :  { %v1966_v26 = vstv %s2071_s29 }
 0x408   :  { %v1967_v61 = vsel %vm1965_vm1, %v1966_v26, 0.0 }
 0x409   :  { %v1969_v54 = vsel %vm1964_vm4, %v1968_v30, %v1967_v61 }
 0x40a   :  { %1970 = vst [vmem:[%s3799_s5] sm:$0xff] %v1969_v54 }

</bundles_post_ra>
